<compile_context>
chip_gen: v7x
topology: tpu7x:2x2x1
jax: 0.10.0
libtpu: 0.0.40
codegen_flags: <defaults>
</compile_context>

<pallas_src>
import jax
import jax.numpy as jnp
from jax.experimental import pallas as pl
from jax.experimental.pallas import tpu as pltpu


HIDDEN = 200           # config['stitch_hidden_size']
HIDDEN_PADDED = 256    # lane-aligned hidden width used inside the kernel
N_HIDDEN_LAYERS = 3    # config['stitch_mlp_n_layers']


def _round_up(x, m):
    return (x + m - 1) // m * m


def _mlp_kernel(x_ref, w1_ref, b1_ref, w2_ref, b2_ref, w3_ref, b3_ref,
                w4_ref, b4_ref, o_ref):
    """Fused feature-major MLP on an (F, tile_n) tile -> (1, tile_n) output.

    Activations are (Hp, tile_n): hidden units on sublanes, samples on lanes.
    Matmuls run on the MXU in bf16 with f32 accumulation; bias-add/ReLU in f32.
    """
    x = x_ref[...].astype(jnp.bfloat16)                               # (F, tn)

    h = jnp.dot(w1_ref[...], x, preferred_element_type=jnp.float32)   # (Hp, tn)
    h = jnp.maximum(h + b1_ref[...], 0.0).astype(jnp.bfloat16)

    h = jnp.dot(w2_ref[...], h, preferred_element_type=jnp.float32)
    h = jnp.maximum(h + b2_ref[...], 0.0).astype(jnp.bfloat16)

    h = jnp.dot(w3_ref[...], h, preferred_element_type=jnp.float32)
    h = jnp.maximum(h + b3_ref[...], 0.0).astype(jnp.bfloat16)

    # Layer 4: (1, Hp) @ (Hp, tile_n) -> natively lane-dense (1, tile_n) row.
    out = jnp.dot(w4_ref[...], h, preferred_element_type=jnp.float32)
    o_ref[...] = (out + b4_ref[...]).astype(o_ref.dtype)


def _choose_tile(N, tile_n_max=4096):
    """Row-tile size: large (mult. of 256) but >=2 grid steps when possible."""
    if N < 512:
        return _round_up(max(N, 1), 256)
    # At least 2 tiles so both v7x TensorCores get work; tiles near-equal and
    # capped at tile_n_max (re-derived for v7x's 64 MiB VMEM).
    n_tiles = max(2, pl.cdiv(N, tile_n_max))
    return min(tile_n_max, _round_up(pl.cdiv(N, n_tiles), 256))


def stitch_mlp_pallas(x_flat, padded_params, *, tile_n_max=4096):
    """x_flat: (N, F) float32. Returns (N,) float32."""
    N, F = x_flat.shape
    w1t, b1, w2t, b2, w3t, b3, w4t, b4 = padded_params
    Hp = w1t.shape[0]

    tile_n = _choose_tile(N, tile_n_max)
    Np = _round_up(N, tile_n)
    num_tiles = Np // tile_n

    # Feature-major input: (F, Np).  Padded rows flow through the MLP and are
    # sliced off at the end (no in-kernel cross-row reductions, so no masking
    # needed).  The wrapper-side transpose is layout plumbing; the MLP itself
    # is strongly compute-bound so the extra x pass is negligible.
    x_fm = jnp.pad(x_flat, ((0, Np - N), (0, 0))).T                   # (F, Np)

    full = lambda shape: pl.BlockSpec(shape, lambda i: (0,) * len(shape))

    flops = 2 * Np * (F * Hp + 2 * Hp * Hp + Hp)
    bytes_accessed = (Np * F * 4 + Np * 4                      # x in, out
                      + (Hp * F + 2 * Hp * Hp + Hp) * 2        # bf16 weights
                      + (3 * Hp + 1) * 4)                      # f32 biases

    out = pl.pallas_call(
        _mlp_kernel,
        out_shape=jax.ShapeDtypeStruct((1, Np), jnp.float32),
        grid_spec=pltpu.PrefetchScalarGridSpec(
            num_scalar_prefetch=0,
            grid=(num_tiles,),
            in_specs=[
                pl.BlockSpec((F, tile_n), lambda i: (0, i)),    # x column tile
                full((Hp, F)), full((Hp, 1)),                   # layer 1
                full((Hp, Hp)), full((Hp, 1)),                  # layer 2
                full((Hp, Hp)), full((Hp, 1)),                  # layer 3
                full((1, Hp)), full((1, 1)),                    # layer 4
            ],
            out_specs=pl.BlockSpec((1, tile_n), lambda i: (0, i)),
        ),
        compiler_params=pltpu.CompilerParams(
            dimension_semantics=("parallel",),
            # ~16 MiB peak at tile_n=4096 (f32 activation slabs + bf16 copies
            # + pipeline buffers); 40 MiB leaves headroom yet stays under
            # v7x's 64 MiB physical VMEM and above v5e's 16 MiB scoped default.
            vmem_limit_bytes=40 * 1024 * 1024),
        cost_estimate=pl.CostEstimate(
            flops=flops, transcendentals=0, bytes_accessed=bytes_accessed),
    )(x_fm, w1t, b1, w2t, b2, w3t, b3, w4t, b4)

    return out.reshape(Np)[:N]


def init_params(key, pair_feature_len, hidden=HIDDEN):
    """PyTorch nn.Linear-style init (uniform +/- 1/sqrt(fan_in)).

    Weights stored as (in, out) so the logical model computes x @ W + b,
    matching nn.Linear's x @ W.T + b.  These are the f32, H=200 params.
    """
    dims = [pair_feature_len] + [hidden] * N_HIDDEN_LAYERS + [1]
    params = []
    for i in range(len(dims) - 1):
        fan_in, fan_out = dims[i], dims[i + 1]
        key, kw, kb = jax.random.split(key, 3)
        bound = 1.0 / jnp.sqrt(fan_in)
        w = jax.random.uniform(kw, (fan_in, fan_out), jnp.float32, -bound, bound)
        b = jax.random.uniform(kb, (1, fan_out), jnp.float32, -bound, bound)
        params += [w, b]
    return tuple(params)


def prep_params(params, hidden_padded=HIDDEN_PADDED):
    """Transpose to feature-major, pad hidden 200->256, cast weights to bf16.

    Feature-major kernel computes h_fm = W.T @ x_fm, so weights are stored as
    (out, in).  Padded hidden rows/cols are zero and ReLU(0 + 0-bias) == 0, so
    the result is identical to the unpadded MLP (up to bf16 rounding of the
    weights and of the layer inputs).  Biases stay f32 as (Hp, 1) columns so
    they broadcast over the lane (sample) axis.
    """
    w1, b1, w2, b2, w3, b3, w4, b4 = params
    H = w1.shape[1]
    Hp = max(hidden_padded, _round_up(H, 128))
    ph = Hp - H

    w1t = jnp.pad(w1.T, ((0, ph), (0, 0))).astype(jnp.bfloat16)    # (Hp, F)
    b1c = jnp.pad(b1.T, ((0, ph), (0, 0))).astype(jnp.float32)     # (Hp, 1)
    w2t = jnp.pad(w2.T, ((0, ph), (0, ph))).astype(jnp.bfloat16)   # (Hp, Hp)
    b2c = jnp.pad(b2.T, ((0, ph), (0, 0))).astype(jnp.float32)
    w3t = jnp.pad(w3.T, ((0, ph), (0, ph))).astype(jnp.bfloat16)   # (Hp, Hp)
    b3c = jnp.pad(b3.T, ((0, ph), (0, 0))).astype(jnp.float32)
    w4t = jnp.pad(w4.T, ((0, 0), (0, ph))).astype(jnp.bfloat16)    # (1, Hp)
    b4c = b4.astype(jnp.float32)                                   # (1, 1)
    return (w1t, b1c, w2t, b2c, w3t, b3c, w4t, b4c)


@jax.jit
def stitch_on_edge_forward(pairs_batch, padded_params):
    """Equivalent of StitchOnEdge3DPairs.forward: (..., F) -> (...,)."""
    return_shape = pairs_batch.shape[:-1]
    F = pairs_batch.shape[-1]
    x_flat = pairs_batch.reshape(-1, F).astype(jnp.float32)
    out = stitch_mlp_pallas(x_flat, padded_params)
    return out.reshape(return_shape)


def _reference_forward(pairs_batch, params):
    """Plain-JAX f32 reference of the same MLP (PyTorch semantics)."""
    w1, b1, w2, b2, w3, b3, w4, b4 = params
    x = pairs_batch.reshape(-1, pairs_batch.shape[-1]).astype(jnp.float32)
    h = jnp.maximum(x @ w1 + b1, 0.0)
    h = jnp.maximum(h @ w2 + b2, 0.0)
    h = jnp.maximum(h @ w3 + b3, 0.0)
    o = h @ w4 + b4
    return o.reshape(pairs_batch.shape[:-1])


if __name__ == "__main__":
    key = jax.random.PRNGKey(0)
    k_param, k_data = jax.random.split(key)

    # data_config['element_size'] (pair feature length)
    PAIR_FEATURE_LEN = 32
    BATCH = 2
    NUM_PAIRS = 8

    params = init_params(k_param, PAIR_FEATURE_LEN)
    padded_params = prep_params(params)

    pairs_batch = jax.random.normal(
        k_data, (BATCH, NUM_PAIRS, PAIR_FEATURE_LEN), jnp.float32)

    out = stitch_on_edge_forward(pairs_batch, padded_params)
    out = jax.block_until_ready(out)
    assert out.shape == (BATCH, NUM_PAIRS), out.shape

    ref = _reference_forward(pairs_batch, params)
    max_err = float(jnp.max(jnp.abs(out - ref)))
    # bf16 weights/activations with f32 accumulation: small rounding vs f32 ref.
    assert jnp.allclose(out, ref, atol=2e-2, rtol=2e-2), max_err

    print("KERNEL_OK")
</pallas_src>

<mosaic_0001>
module attributes {stable_mosaic.version = 11 : i64} {
  func.func @_mlp_kernel(%arg0: i32, %arg1: memref<32x256xf32, #tpu.memory_space<vmem>>, %arg2: memref<256x32xbf16, #tpu.memory_space<vmem>>, %arg3: memref<256x1xf32, #tpu.memory_space<vmem>>, %arg4: memref<256x256xbf16, #tpu.memory_space<vmem>>, %arg5: memref<256x1xf32, #tpu.memory_space<vmem>>, %arg6: memref<256x256xbf16, #tpu.memory_space<vmem>>, %arg7: memref<256x1xf32, #tpu.memory_space<vmem>>, %arg8: memref<1x256xbf16, #tpu.memory_space<vmem>>, %arg9: memref<1x1xf32, #tpu.memory_space<vmem>>, %arg10: memref<1x256xf32, #tpu.memory_space<vmem>>) attributes {dimension_semantics = [#tpu.dimension_semantics<parallel>], iteration_bounds = array<i64: 1>, scalar_prefetch = 0 : i64, scratch_operands = 0 : i64, tpu.core_type = #tpu.core_type<tc>, window_params = [{transform_indices = @transform_0, window_bounds = array<i64: 32, 256>}, {pipeline_mode = #tpu.pipeline_mode<synchronous>, transform_indices = @transform_1, window_bounds = array<i64: 256, 32>}, {pipeline_mode = #tpu.pipeline_mode<synchronous>, transform_indices = @transform_2, window_bounds = array<i64: 256, 1>}, {pipeline_mode = #tpu.pipeline_mode<synchronous>, transform_indices = @transform_3, window_bounds = array<i64: 256, 256>}, {pipeline_mode = #tpu.pipeline_mode<synchronous>, transform_indices = @transform_4, window_bounds = array<i64: 256, 1>}, {pipeline_mode = #tpu.pipeline_mode<synchronous>, transform_indices = @transform_5, window_bounds = array<i64: 256, 256>}, {pipeline_mode = #tpu.pipeline_mode<synchronous>, transform_indices = @transform_6, window_bounds = array<i64: 256, 1>}, {pipeline_mode = #tpu.pipeline_mode<synchronous>, transform_indices = @transform_7, window_bounds = array<i64: 1, 256>}, {pipeline_mode = #tpu.pipeline_mode<synchronous>, transform_indices = @transform_8, window_bounds = array<i64: 1, 1>}, {transform_indices = @transform_9, window_bounds = array<i64: 1, 256>}]} {
    %c0 = arith.constant 0 : index
    %c0_0 = arith.constant 0 : index
    %0 = vector.load %arg1[%c0, %c0_0] : memref<32x256xf32, #tpu.memory_space<vmem>>, vector<32x256xf32>
    %1 = arith.truncf %0 : vector<32x256xf32> to vector<32x256xbf16>
    %c0_1 = arith.constant 0 : index
    %c0_2 = arith.constant 0 : index
    %2 = vector.load %arg2[%c0_1, %c0_2] : memref<256x32xbf16, #tpu.memory_space<vmem>>, vector<256x32xbf16>
    %cst = arith.constant dense<0.000000e+00> : vector<256x256xf32>
    %3 = tpu.matmul %2, %1, %cst {dimension_numbers = #tpu.dot_dimension_numbers<[1], [0], [0], [1], [0, 0, 1, 1], [], []>} : vector<256x32xbf16>, vector<32x256xbf16>, vector<256x256xf32> -> vector<256x256xf32>
    %c0_3 = arith.constant 0 : index
    %c0_4 = arith.constant 0 : index
    %4 = vector.load %arg3[%c0_3, %c0_4] : memref<256x1xf32, #tpu.memory_space<vmem>>, vector<256x1xf32>
    %5 = vector.broadcast %4 : vector<256x1xf32> to vector<256x256xf32>
    %6 = arith.addf %3, %5 : vector<256x256xf32>
    %cst_5 = arith.constant 0.000000e+00 : f32
    %7 = vector.broadcast %cst_5 : f32 to vector<256x256xf32>
    %8 = arith.maximumf %6, %7 : vector<256x256xf32>
    %9 = arith.truncf %8 : vector<256x256xf32> to vector<256x256xbf16>
    %c0_6 = arith.constant 0 : index
    %c0_7 = arith.constant 0 : index
    %10 = vector.load %arg4[%c0_6, %c0_7] : memref<256x256xbf16, #tpu.memory_space<vmem>>, vector<256x256xbf16>
    %cst_8 = arith.constant dense<0.000000e+00> : vector<256x256xf32>
    %11 = tpu.matmul %10, %9, %cst_8 {dimension_numbers = #tpu.dot_dimension_numbers<[1], [0], [0], [1], [0, 0, 1, 1], [], []>} : vector<256x256xbf16>, vector<256x256xbf16>, vector<256x256xf32> -> vector<256x256xf32>
    %c0_9 = arith.constant 0 : index
    %c0_10 = arith.constant 0 : index
    %12 = vector.load %arg5[%c0_9, %c0_10] : memref<256x1xf32, #tpu.memory_space<vmem>>, vector<256x1xf32>
    %13 = vector.broadcast %12 : vector<256x1xf32> to vector<256x256xf32>
    %14 = arith.addf %11, %13 : vector<256x256xf32>
    %cst_11 = arith.constant 0.000000e+00 : f32
    %15 = vector.broadcast %cst_11 : f32 to vector<256x256xf32>
    %16 = arith.maximumf %14, %15 : vector<256x256xf32>
    %17 = arith.truncf %16 : vector<256x256xf32> to vector<256x256xbf16>
    %c0_12 = arith.constant 0 : index
    %c0_13 = arith.constant 0 : index
    %18 = vector.load %arg6[%c0_12, %c0_13] : memref<256x256xbf16, #tpu.memory_space<vmem>>, vector<256x256xbf16>
    %cst_14 = arith.constant dense<0.000000e+00> : vector<256x256xf32>
    %19 = tpu.matmul %18, %17, %cst_14 {dimension_numbers = #tpu.dot_dimension_numbers<[1], [0], [0], [1], [0, 0, 1, 1], [], []>} : vector<256x256xbf16>, vector<256x256xbf16>, vector<256x256xf32> -> vector<256x256xf32>
    %c0_15 = arith.constant 0 : index
    %c0_16 = arith.constant 0 : index
    %20 = vector.load %arg7[%c0_15, %c0_16] : memref<256x1xf32, #tpu.memory_space<vmem>>, vector<256x1xf32>
    %21 = vector.broadcast %20 : vector<256x1xf32> to vector<256x256xf32>
    %22 = arith.addf %19, %21 : vector<256x256xf32>
    %cst_17 = arith.constant 0.000000e+00 : f32
    %23 = vector.broadcast %cst_17 : f32 to vector<256x256xf32>
    %24 = arith.maximumf %22, %23 : vector<256x256xf32>
    %25 = arith.truncf %24 : vector<256x256xf32> to vector<256x256xbf16>
    %c0_18 = arith.constant 0 : index
    %c0_19 = arith.constant 0 : index
    %26 = vector.load %arg8[%c0_18, %c0_19] : memref<1x256xbf16, #tpu.memory_space<vmem>>, vector<1x256xbf16>
    %cst_20 = arith.constant dense<0.000000e+00> : vector<1x256xf32>
    %27 = tpu.matmul %26, %25, %cst_20 {dimension_numbers = #tpu.dot_dimension_numbers<[1], [0], [0], [1], [0, 0, 1, 1], [], []>} : vector<1x256xbf16>, vector<256x256xbf16>, vector<1x256xf32> -> vector<1x256xf32>
    %c0_21 = arith.constant 0 : index
    %c0_22 = arith.constant 0 : index
    %28 = vector.load %arg9[%c0_21, %c0_22] : memref<1x1xf32, #tpu.memory_space<vmem>>, vector<1x1xf32>
    %29 = vector.broadcast %28 : vector<1x1xf32> to vector<1x256xf32>
    %30 = arith.addf %27, %29 : vector<1x256xf32>
    %c0_23 = arith.constant 0 : index
    %c0_24 = arith.constant 0 : index
    %31 = vector.load %arg10[%c0_23, %c0_24] : memref<1x256xf32, #tpu.memory_space<vmem>>, vector<1x256xf32>
    tpu.vector_store %arg10[%c0_23, %c0_24], %30 {strides = array<i32>} : memref<1x256xf32, #tpu.memory_space<vmem>>, vector<1x256xf32>,
    return
  }
  func.func @transform_0(%arg0: i32) -> (i32, i32) {
    %c0_i32 = arith.constant 0 : i32
    %c0_i32_0 = arith.constant 0 : i32
    return %c0_i32, %arg0 : i32, i32
  }
  func.func @transform_1(%arg0: i32) -> (i32, i32) {
    %c0_i32 = arith.constant 0 : i32
    %c0_i32_0 = arith.constant 0 : i32
    %c0_i32_1 = arith.constant 0 : i32
    return %c0_i32, %c0_i32_0 : i32, i32
  }
  func.func @transform_2(%arg0: i32) -> (i32, i32) {
    %c0_i32 = arith.constant 0 : i32
    %c0_i32_0 = arith.constant 0 : i32
    %c0_i32_1 = arith.constant 0 : i32
    return %c0_i32, %c0_i32_0 : i32, i32
  }
  func.func @transform_3(%arg0: i32) -> (i32, i32) {
    %c0_i32 = arith.constant 0 : i32
    %c0_i32_0 = arith.constant 0 : i32
    %c0_i32_1 = arith.constant 0 : i32
    return %c0_i32, %c0_i32_0 : i32, i32
  }
  func.func @transform_4(%arg0: i32) -> (i32, i32) {
    %c0_i32 = arith.constant 0 : i32
    %c0_i32_0 = arith.constant 0 : i32
    %c0_i32_1 = arith.constant 0 : i32
    return %c0_i32, %c0_i32_0 : i32, i32
  }
  func.func @transform_5(%arg0: i32) -> (i32, i32) {
    %c0_i32 = arith.constant 0 : i32
    %c0_i32_0 = arith.constant 0 : i32
    %c0_i32_1 = arith.constant 0 : i32
    return %c0_i32, %c0_i32_0 : i32, i32
  }
  func.func @transform_6(%arg0: i32) -> (i32, i32) {
    %c0_i32 = arith.constant 0 : i32
    %c0_i32_0 = arith.constant 0 : i32
    %c0_i32_1 = arith.constant 0 : i32
    return %c0_i32, %c0_i32_0 : i32, i32
  }
  func.func @transform_7(%arg0: i32) -> (i32, i32) {
    %c0_i32 = arith.constant 0 : i32
    %c0_i32_0 = arith.constant 0 : i32
    %c0_i32_1 = arith.constant 0 : i32
    return %c0_i32, %c0_i32_0 : i32, i32
  }
  func.func @transform_8(%arg0: i32) -> (i32, i32) {
    %c0_i32 = arith.constant 0 : i32
    %c0_i32_0 = arith.constant 0 : i32
    %c0_i32_1 = arith.constant 0 : i32
    return %c0_i32, %c0_i32_0 : i32, i32
  }
  func.func @transform_9(%arg0: i32) -> (i32, i32) {
    %c0_i32 = arith.constant 0 : i32
    %c0_i32_0 = arith.constant 0 : i32
    return %c0_i32, %arg0 : i32, i32
  }
}

</mosaic_0001>

<bundles_post_ra>
// kernel: stitch_on_edge_forward.1
= control target key start
LH: loop header
LB: loop body
LE: loop exit
PB: predicated region body
PF: predicated region fallthrough
CT: control target
= control target key end

     0   :  { %v2356_v0 = vmov 0   ;;  %vm351_vm0 = vcmask 261120   ;;  %s3112_s2 = inlined_call_operand.vmem [shape: f32[256,1], index: 2, kind: input, shape index: {}]   ;;  %s3113_s0 = inlined_call_operand.vmem [shape: f32[32,256], index: 0, kind: input, shape index: {}]   ;;  %s3114_s1 = inlined_call_operand.vmem [shape: bf16[256,32], index: 1, kind: input, shape index: {}]   ;;  %s3115_s8 = inlined_call_operand.<no memory space> [shape: f32[1,1], index: 8, kind: input, shape index: {}]   ;;  %s3116_s4 = inlined_call_operand.vmem [shape: f32[256,1], index: 4, kind: input, shape index: {}]   ;;  %s3117_s6 = inlined_call_operand.vmem [shape: f32[256,1], index: 6, kind: input, shape index: {}]   ;;  %s3118_s3 = inlined_call_operand.vmem [shape: bf16[256,256], index: 3, kind: input, shape index: {}]   ;;  %s3119_s5 = inlined_call_operand.vmem [shape: bf16[256,256], index: 5, kind: input, shape index: {}]   ;;  %s3120_s7 = inlined_call_operand.vmem [shape: bf16[1,256], index: 7, kind: input, shape index: {}]   ;;  %s3121_s9 = inlined_call_operand.vmem [shape: f32[1,256], index: 9, kind: output, shape index: {}]  }
   0x1   :  { %2243 = vset.pattern.permute.xlu1 %v2356_v0  ;;  %2242 = vset.pattern.permute.xlu0 %v2356_v0  ;;  %v81_v1 = vld [vmem:[%s3112_s2 + $0x10] sm:$0xff]  ;;  %v79_v2 = vld [vmem:[%s3112_s2] sm:$0xff]  ;;  %v36_v3 = vld [vmem:[%s3113_s0 + $0x8] sm:$0xff]  ;;  %v14_v57 = vstv %s3115_s8 }
   0x2   :  { %123 = vperm.xlu1 %2243, %v81_v1   ;;  %113 = vperm.xlu0 %2242, %v79_v2   ;;  %v38_v4 = vld [vmem:[%s3113_s0 + $0x18] sm:$0xff]  ;;  %v35_v5 = vld [vmem:[%s3113_s0] sm:$0xff]  ;;  %v37_v6 = vld [vmem:[%s3113_s0 + $0x10] sm:$0xff]  ;;  %15 = vst [vmem:[#allocation2] sm:$0x1] %v14_v57 }
   0x3   :  { %v44_v7 = vpack.c.bf16 %v38_v4, %v36_v3  ;;  %v43_v8 = vpack.c.bf16 %v37_v6, %v35_v5  ;;  %v82_v9 = vld [vmem:[%s3112_s2 + $0x18] sm:$0xff]  ;;  %v80_v10 = vld [vmem:[%s3112_s2 + $0x8] sm:$0xff]  ;;  %432 = vmatprep.mubr.bf16.mxu0 %v2356_v0  ;;  %512 = vmatprep.mubr.bf16.mxu1 %v2356_v0  ;;  %v39_v13 = vld [vmem:[%s3113_s0 + $0x20] sm:$0xff] }
   0x4   :  { %v40_v11 = vld [vmem:[%s3113_s0 + $0x28] sm:$0xff]  ;;  %v42_v12 = vld [vmem:[%s3113_s0 + $0x38] sm:$0xff]  ;;  %v41_v14 = vld [vmem:[%s3113_s0 + $0x30] sm:$0xff] }
   0x5   :  { %400 = vmatprep.subr.bf16.mxu0 %v44_v7  ;;  %2236 = vmatprep.subr.bf16.mxu1 %v44_v7  ;;  %v46_v15 = vpack.c.bf16 %v42_v12, %v40_v11  ;;  %v45_v16 = vpack.c.bf16 %v41_v14, %v39_v13  ;;  %v84_v17 = vld [vmem:[%s3112_s2 + $0x28] sm:$0xff]  ;;  %v83_v18 = vld [vmem:[%s3112_s2 + $0x20] sm:$0xff]  ;;  %v86_v21 = vld [vmem:[%s3112_s2 + $0x38] sm:$0xff] }
   0x6   :  { %401 = vmatpush1.bf16.msra.mxu0 %v43_v8  ;;  %2238 = vmatpush1.bf16.msra.mxu1 %v43_v8  ;;  %v2244_v19 = vld [vmem:[%s3114_s1] sm:$0xff]   ;;  %v85_v22 = vld [vmem:[%s3112_s2 + $0x30] sm:$0xff]  ;;  %v88_v23 = vld [vmem:[%s3112_s2 + $0x48] sm:$0xff] }
   0x7   :  { %128 = vperm.xlu1 %2243, %v82_v9   ;;  %118 = vperm.xlu0 %2242, %v80_v10   ;;  %v2245_v20 = vld [vmem:[%s3114_s1 + $0x40] sm:$0xff]   ;;  %v2246_v25 = vld [vmem:[%s3114_s1 + $0x8] sm:$0xff]   ;;  %v90_v27 = vld [vmem:[%s3112_s2 + $0x58] sm:$0xff] }
   0x8   :  { %402 = vmatprep.subr.bf16.mxu0 %v46_v15  ;;  %2237 = vmatprep.subr.bf16.mxu1 %v46_v15  ;;  %v87_v24 = vld [vmem:[%s3112_s2 + $0x40] sm:$0xff]  ;;  %v2247_v26 = vld [vmem:[%s3114_s1 + $0x48] sm:$0xff]   ;;  %v89_v28 = vld [vmem:[%s3112_s2 + $0x50] sm:$0xff] }
   0x9   :  { %v92_v29 = vld [vmem:[%s3112_s2 + $0x68] sm:$0xff]  ;;  %v91_v30 = vld [vmem:[%s3112_s2 + $0x60] sm:$0xff]  ;;  %v2248_v31 = vld [vmem:[%s3114_s1 + $0x10] sm:$0xff]  }
   0xa   :  { %403 = vmatpush1.bf16.msra.mxu0 %v45_v16  ;;  %2239 = vmatpush1.bf16.msra.mxu1 %v45_v16  ;;  %v2249_v32 = vld [vmem:[%s3114_s1 + $0x50] sm:$0xff]   ;;  %v94_v33 = vld [vmem:[%s3112_s2 + $0x78] sm:$0xff]  ;;  %v96_v35 = vld [vmem:[%s3112_s2 + $0x88] sm:$0xff] }
   0xb   :  { %138 = vperm.xlu1 %2243, %v84_v17   ;;  %133 = vperm.xlu0 %2242, %v83_v18   ;;  %v93_v34 = vld [vmem:[%s3112_s2 + $0x70] sm:$0xff]  ;;  %v95_v36 = vld [vmem:[%s3112_s2 + $0x80] sm:$0xff]  ;;  %v2250_v37 = vld [vmem:[%s3114_s1 + $0x18] sm:$0xff]  }
   0xc   :  { %v2251_v38 = vld [vmem:[%s3114_s1 + $0x58] sm:$0xff]   ;;  %v97_v40 = vld [vmem:[%s3112_s2 + $0x90] sm:$0xff]  ;;  %v100_v41 = vld [vmem:[%s3112_s2 + $0xa8] sm:$0xff] }
   0xd   :  { %2155 = vmatmul.mubr.msk.bf16.vlgmr.msra.gmra.mrb[0].mxu0 %vm351_vm0, %v2244_v19  ;;  %2163 = vmatmul.mubr.msk.bf16.vlgmr.msra.gmra.mrb[0].mxu1 %vm351_vm0, %v2245_v20  ;;  %v98_v39 = vld [vmem:[%s3112_s2 + $0x98] sm:$0xff]  ;;  %v99_v42 = vld [vmem:[%s3112_s2 + $0xa0] sm:$0xff]  ;;  %v101_v46 = vld [vmem:[%s3112_s2 + $0xb0] sm:$0xff] }
   0xe   :  { %442 = vmatprep.mubr.bf16.mxu0 %v2356_v0  ;;  %522 = vmatprep.mubr.bf16.mxu1 %v2356_v0  ;;  %v2252_v43 = vld [vmem:[%s3114_s1 + $0x20] sm:$0xff]   ;;  %v102_v45 = vld [vmem:[%s3112_s2 + $0xb8] sm:$0xff]  ;;  %v104_v47 = vld [vmem:[%s3112_s2 + $0xc8] sm:$0xff] }
   0xf   :  { %148 = vperm.xlu1 %2243, %v86_v21   ;;  %143 = vperm.xlu0 %2242, %v85_v22   ;;  %v2253_v44 = vld [vmem:[%s3114_s1 + $0x60] sm:$0xff]   ;;  %v2254_v49 = vld [vmem:[%s3114_s1 + $0x28] sm:$0xff]   ;;  %v106_v51 = vld [vmem:[%s3112_s2 + $0xd8] sm:$0xff] }
  0x10   :  { %v103_v48 = vld [vmem:[%s3112_s2 + $0xc0] sm:$0xff]  ;;  %v2255_v50 = vld [vmem:[%s3114_s1 + $0x68] sm:$0xff]   ;;  %v105_v52 = vld [vmem:[%s3112_s2 + $0xd0] sm:$0xff] }
  0x11   :  { %v108_v53 = vld [vmem:[%s3112_s2 + $0xe8] sm:$0xff]  ;;  %v107_v54 = vld [vmem:[%s3112_s2 + $0xe0] sm:$0xff]  ;;  %v2256_v55 = vld [vmem:[%s3114_s1 + $0x30] sm:$0xff]  }
  0x12   :  { %v2257_v56 = vld [vmem:[%s3114_s1 + $0x70] sm:$0xff]   ;;  %v110_v58 = vld [vmem:[%s3112_s2 + $0xf8] sm:$0xff]  ;;  %v722_v60 = vld [vmem:[%s3116_s4 + $0x8] sm:$0xff] }
  0x13   :  { %158 = vperm.xlu1 %2243, %v88_v23   ;;  %153 = vperm.xlu0 %2242, %v87_v24   ;;  %v109_v59 = vld [vmem:[%s3112_s2 + $0xf0] sm:$0xff]  ;;  %v721_v61 = vld [vmem:[%s3116_s4] sm:$0xff]  ;;  %v2258_v62 = vld [vmem:[%s3114_s1 + $0x38] sm:$0xff]  }
  0x14   :  { %v2259_v63 = vld [vmem:[%s3114_s1 + $0x78] sm:$0xff]   ;;  %v723_v1 = vld [vmem:[%s3116_s4 + $0x10] sm:$0xff]  ;;  %v726_v2 = vld [vmem:[%s3116_s4 + $0x28] sm:$0xff] }
  0x15   :  { %2156 = vmatmul.mubr.msk.bf16.gmra.mrb[4].mxu0 %vm351_vm0, %v2246_v25  ;;  %2164 = vmatmul.mubr.msk.bf16.gmra.mrb[4].mxu1 %vm351_vm0, %v2247_v26  ;;  %v725_v3 = vld [vmem:[%s3116_s4 + $0x20] sm:$0xff]  ;;  %v728_v4 = vld [vmem:[%s3116_s4 + $0x38] sm:$0xff]  ;;  %v727_v5 = vld [vmem:[%s3116_s4 + $0x30] sm:$0xff] }
  0x16   :  { %452 = vmatprep.mubr.bf16.mxu0 %v2356_v0  ;;  %532 = vmatprep.mubr.bf16.mxu1 %v2356_v0  ;;  %v730_v6 = vld [vmem:[%s3116_s4 + $0x48] sm:$0xff]  ;;  %v729_v7 = vld [vmem:[%s3116_s4 + $0x40] sm:$0xff]  ;;  %v732_v8 = vld [vmem:[%s3116_s4 + $0x58] sm:$0xff] }
  0x17   :  { %168 = vperm.xlu1 %2243, %v90_v27   ;;  %163 = vperm.xlu0 %2242, %v89_v28   ;;  %v731_v9 = vld [vmem:[%s3116_s4 + $0x50] sm:$0xff]  ;;  %v734_v10 = vld [vmem:[%s3116_s4 + $0x68] sm:$0xff]  ;;  %v733_v11 = vld [vmem:[%s3116_s4 + $0x60] sm:$0xff] }
  0x18   :  { %v736_v12 = vld [vmem:[%s3116_s4 + $0x78] sm:$0xff]  ;;  %v735_v13 = vld [vmem:[%s3116_s4 + $0x70] sm:$0xff]  ;;  %v738_v14 = vld [vmem:[%s3116_s4 + $0x88] sm:$0xff] }
  0x19   :  { %v737_v15 = vld [vmem:[%s3116_s4 + $0x80] sm:$0xff]  ;;  %v740_v16 = vld [vmem:[%s3116_s4 + $0x98] sm:$0xff]  ;;  %v739_v17 = vld [vmem:[%s3116_s4 + $0x90] sm:$0xff] }
  0x1a   :  { %v742_v18 = vld [vmem:[%s3116_s4 + $0xa8] sm:$0xff]  ;;  %v741_v19 = vld [vmem:[%s3116_s4 + $0xa0] sm:$0xff]  ;;  %v744_v20 = vld [vmem:[%s3116_s4 + $0xb8] sm:$0xff] }
  0x1b   :  { %178 = vperm.xlu1 %2243, %v92_v29   ;;  %173 = vperm.xlu0 %2242, %v91_v30   ;;  %v743_v21 = vld [vmem:[%s3116_s4 + $0xb0] sm:$0xff]  ;;  %v746_v22 = vld [vmem:[%s3116_s4 + $0xc8] sm:$0xff]  ;;  %v745_v23 = vld [vmem:[%s3116_s4 + $0xc0] sm:$0xff] }
  0x1c   :  { %v748_v24 = vld [vmem:[%s3116_s4 + $0xd8] sm:$0xff]  ;;  %v747_v25 = vld [vmem:[%s3116_s4 + $0xd0] sm:$0xff]  ;;  %v750_v26 = vld [vmem:[%s3116_s4 + $0xe8] sm:$0xff] }
  0x1d   :  { %2157 = vmatmul.mubr.msk.bf16.gmra.mrb[8].mxu0 %vm351_vm0, %v2248_v31  ;;  %2165 = vmatmul.mubr.msk.bf16.gmra.mrb[8].mxu1 %vm351_vm0, %v2249_v32  ;;  %v749_v27 = vld [vmem:[%s3116_s4 + $0xe0] sm:$0xff]  ;;  %v752_v28 = vld [vmem:[%s3116_s4 + $0xf8] sm:$0xff]  ;;  %v751_v29 = vld [vmem:[%s3116_s4 + $0xf0] sm:$0xff] }
  0x1e   :  { %462 = vmatprep.mubr.bf16.mxu0 %v2356_v0  ;;  %542 = vmatprep.mubr.bf16.mxu1 %v2356_v0  ;;  %v1395_v30 = vld [vmem:[%s3117_s6 + $0x8] sm:$0xff]  ;;  %v1394_v31 = vld [vmem:[%s3117_s6] sm:$0xff]  ;;  %v1397_v32 = vld [vmem:[%s3117_s6 + $0x18] sm:$0xff] }
  0x1f   :  { %188 = vperm.xlu1 %2243, %v94_v33   ;;  %183 = vperm.xlu0 %2242, %v93_v34   ;;  %v1396_v33 = vld [vmem:[%s3117_s6 + $0x10] sm:$0xff]  ;;  %v1399_v34 = vld [vmem:[%s3117_s6 + $0x28] sm:$0xff] }
  0x23   :  { %198 = vperm.xlu1 %2243, %v96_v35   ;;  %193 = vperm.xlu0 %2242, %v95_v36   ;;  %v1398_v35 = vld [vmem:[%s3117_s6 + $0x20] sm:$0xff]  ;;  %v1401_v36 = vld [vmem:[%s3117_s6 + $0x38] sm:$0xff] }
  0x25   :  { %2158 = vmatmul.mubr.msk.bf16.gmra.mrb[12].mxu0 %vm351_vm0, %v2250_v37  ;;  %2166 = vmatmul.mubr.msk.bf16.gmra.mrb[12].mxu1 %vm351_vm0, %v2251_v38  ;;  %v1400_v37 = vld [vmem:[%s3117_s6 + $0x30] sm:$0xff]  ;;  %v1403_v38 = vld [vmem:[%s3117_s6 + $0x48] sm:$0xff] }
  0x26   :  { %472 = vmatprep.mubr.bf16.mxu0 %v2356_v0  ;;  %552 = vmatprep.mubr.bf16.mxu1 %v2356_v0 }
  0x27   :  { %208 = vperm.xlu1 %2243, %v98_v39   ;;  %203 = vperm.xlu0 %2242, %v97_v40   ;;  %v1402_v39 = vld [vmem:[%s3117_s6 + $0x40] sm:$0xff]  ;;  %v1405_v40 = vld [vmem:[%s3117_s6 + $0x58] sm:$0xff] }
  0x2b   :  { %218 = vperm.xlu1 %2243, %v100_v41   ;;  %213 = vperm.xlu0 %2242, %v99_v42   ;;  %v1404_v41 = vld [vmem:[%s3117_s6 + $0x50] sm:$0xff]  ;;  %v1407_v42 = vld [vmem:[%s3117_s6 + $0x68] sm:$0xff] }
  0x2d   :  { %2159 = vmatmul.mubr.msk.bf16.gmra.mrb[16].mxu0 %vm351_vm0, %v2252_v43  ;;  %2167 = vmatmul.mubr.msk.bf16.gmra.mrb[16].mxu1 %vm351_vm0, %v2253_v44  ;;  %v1406_v43 = vld [vmem:[%s3117_s6 + $0x60] sm:$0xff]  ;;  %v1409_v44 = vld [vmem:[%s3117_s6 + $0x78] sm:$0xff] }
  0x2e   :  { %482 = vmatprep.mubr.bf16.mxu0 %v2356_v0  ;;  %562 = vmatprep.mubr.bf16.mxu1 %v2356_v0 }
  0x2f   :  { %228 = vperm.xlu1 %2243, %v102_v45   ;;  %223 = vperm.xlu0 %2242, %v101_v46   ;;  %v1408_v45 = vld [vmem:[%s3117_s6 + $0x70] sm:$0xff]  ;;  %v1411_v46 = vld [vmem:[%s3117_s6 + $0x88] sm:$0xff] }
  0x33   :  { %238 = vperm.xlu1 %2243, %v104_v47   ;;  %233 = vperm.xlu0 %2242, %v103_v48   ;;  %v1410_v47 = vld [vmem:[%s3117_s6 + $0x80] sm:$0xff]  ;;  %v1413_v48 = vld [vmem:[%s3117_s6 + $0x98] sm:$0xff] }
  0x35   :  { %2160 = vmatmul.mubr.msk.bf16.gmra.mrb[20].mxu0 %vm351_vm0, %v2254_v49  ;;  %2168 = vmatmul.mubr.msk.bf16.gmra.mrb[20].mxu1 %vm351_vm0, %v2255_v50  ;;  %v1412_v49 = vld [vmem:[%s3117_s6 + $0x90] sm:$0xff]  ;;  %v1415_v50 = vld [vmem:[%s3117_s6 + $0xa8] sm:$0xff] }
  0x36   :  { %492 = vmatprep.mubr.bf16.mxu0 %v2356_v0  ;;  %572 = vmatprep.mubr.bf16.mxu1 %v2356_v0 }
  0x37   :  { %248 = vperm.xlu1 %2243, %v106_v51   ;;  %243 = vperm.xlu0 %2242, %v105_v52   ;;  %v1414_v51 = vld [vmem:[%s3117_s6 + $0xa0] sm:$0xff]  ;;  %v1417_v52 = vld [vmem:[%s3117_s6 + $0xb8] sm:$0xff] }
  0x3b   :  { %258 = vperm.xlu1 %2243, %v108_v53   ;;  %253 = vperm.xlu0 %2242, %v107_v54   ;;  %v1416_v53 = vld [vmem:[%s3117_s6 + $0xb0] sm:$0xff] }
  0x3d   :  { %2161 = vmatmul.mubr.msk.bf16.gmra.mrb[24].mxu0 %vm351_vm0, %v2256_v55  ;;  %2169 = vmatmul.mubr.msk.bf16.gmra.mrb[24].mxu1 %vm351_vm0, %v2257_v56  ;;  %v1419_v55 = vld [vmem:[%s3117_s6 + $0xc8] sm:$0xff]  ;;  %v1418_v56 = vld [vmem:[%s3117_s6 + $0xc0] sm:$0xff] }
  0x3e   :  { %502 = vmatprep.mubr.bf16.mxu0 %v2356_v0  ;;  %582 = vmatprep.mubr.bf16.mxu1 %v2356_v0  ;;  %v724_v0 = vld [vmem:[%s3116_s4 + $0x18] sm:$0xff] }
  0x3f   :  { %268 = vperm.xlu1 %2243, %v110_v58   ;;  %263 = vperm.xlu0 %2242, %v109_v59   ;;  %v1421_v58 = vld [vmem:[%s3117_s6 + $0xd8] sm:$0xff]  ;;  %v1420_v59 = vld [vmem:[%s3117_s6 + $0xd0] sm:$0xff] }
  0x43   :  { %760 = vperm.xlu1 %2243, %v722_v60   ;;  %755 = vperm.xlu0 %2242, %v721_v61  }
  0x45   :  { %2162 = vmatmul.mubr.msk.bf16.gmra.mrb[28].mxu0 %vm351_vm0, %v2258_v62  ;;  %2170 = vmatmul.mubr.msk.bf16.gmra.mrb[28].mxu1 %vm351_vm0, %v2259_v63  ;;  %v1423_v62 = vld [vmem:[%s3117_s6 + $0xe8] sm:$0xff]  ;;  %v1422_v63 = vld [vmem:[%s3117_s6 + $0xe0] sm:$0xff] }
  0x47   :  { %770 = vperm.xlu1 %2243, %v724_v0   ;;  %765 = vperm.xlu0 %2242, %v723_v1   ;;  %v1425_v1 = vld [vmem:[%s3117_s6 + $0xf8] sm:$0xff] }
  0x4b   :  { %780 = vperm.xlu1 %2243, %v726_v2   ;;  %775 = vperm.xlu0 %2242, %v725_v3   ;;  %v1424_v2 = vld [vmem:[%s3117_s6 + $0xf0] sm:$0xff] }
  0x4f   :  { %790 = vperm.xlu1 %2243, %v728_v4   ;;  %785 = vperm.xlu0 %2242, %v727_v5   ;;  %v2036_v4 = vld [vmem:[#allocation2] sm:$0x1] }
  0x53   :  { %800 = vperm.xlu1 %2243, %v730_v6   ;;  %795 = vperm.xlu0 %2242, %v729_v7   ;;  %v2262_v7 = vld [vmem:[%s3118_s3 + $0x4] ss:$8 sps:$4 sm:$0xff]  }
  0x54   :  { %1105 = vmatprep.mubr.bf16.mxu1 %v2262_v7 }
  0x57   :  { %810 = vperm.xlu1 %2243, %v732_v8   ;;  %805 = vperm.xlu0 %2242, %v731_v9  }
  0x5b   :  { %820 = vperm.xlu1 %2243, %v734_v10   ;;  %815 = vperm.xlu0 %2242, %v733_v11  }
  0x5f   :  { %830 = vperm.xlu1 %2243, %v736_v12   ;;  %825 = vperm.xlu0 %2242, %v735_v13  }
  0x63   :  { %840 = vperm.xlu1 %2243, %v738_v14   ;;  %835 = vperm.xlu0 %2242, %v737_v15  }
  0x67   :  { %850 = vperm.xlu1 %2243, %v740_v16   ;;  %845 = vperm.xlu0 %2242, %v739_v17  }
  0x6b   :  { %860 = vperm.xlu1 %2243, %v742_v18   ;;  %855 = vperm.xlu0 %2242, %v741_v19  }
  0x6f   :  { %870 = vperm.xlu1 %2243, %v744_v20   ;;  %865 = vperm.xlu0 %2242, %v743_v21  }
  0x73   :  { %880 = vperm.xlu1 %2243, %v746_v22   ;;  %875 = vperm.xlu0 %2242, %v745_v23  }
  0x77   :  { %890 = vperm.xlu1 %2243, %v748_v24   ;;  %885 = vperm.xlu0 %2242, %v747_v25  }
  0x7b   :  { %900 = vperm.xlu1 %2243, %v750_v26   ;;  %895 = vperm.xlu0 %2242, %v749_v27  }
  0x7f   :  { %910 = vperm.xlu1 %2243, %v752_v28   ;;  %905 = vperm.xlu0 %2242, %v751_v29  }
  0x81   :  { %v114_v54 = vpop.permute.xlu0 %113  ;;  %v2787_v57 = vpop.permute.xlu1 %123 }
  0x83   :  { %1433 = vperm.xlu1 %2243, %v1395_v30   ;;  %1428 = vperm.xlu0 %2242, %v1394_v31  }
  0x86   :  { %v119_v60 = vpop.permute.xlu0 %118  ;;  %v2795_v61 = vpop.permute.xlu1 %128 }
  0x87   :  { %1443 = vperm.xlu1 %2243, %v1397_v32   ;;  %1438 = vperm.xlu0 %2242, %v1396_v33  }
  0x8a   :  { %v2803_v0 = vpop.permute.xlu0 %133  ;;  %v2811_v3 = vpop.permute.xlu1 %138 }
  0x8b   :  { %1453 = vperm.xlu1 %2243, %v1399_v34   ;;  %1448 = vperm.xlu0 %2242, %v1398_v35  }
  0x8e   :  { %v2813_v5 = vpop.permute.xlu0 %143  ;;  %v2815_v6 = vpop.permute.xlu1 %148 }
  0x8f   :  { %1463 = vperm.xlu1 %2243, %v1401_v36   ;;  %1458 = vperm.xlu0 %2242, %v1400_v37  }
  0x92   :  { %v2820_v8 = vpop.permute.xlu0 %153  ;;  %v2822_v9 = vpop.permute.xlu1 %158 }
  0x93   :  { %1473 = vperm.xlu1 %2243, %v1403_v38   ;;  %1468 = vperm.xlu0 %2242, %v1402_v39  }
  0x96   :  { %v2824_v10 = vpop.permute.xlu0 %163  ;;  %v2826_v11 = vpop.permute.xlu1 %168 }
  0x97   :  { %1483 = vperm.xlu1 %2243, %v1405_v40   ;;  %1478 = vperm.xlu0 %2242, %v1404_v41  }
  0x9a   :  { %v2828_v12 = vpop.permute.xlu0 %173  ;;  %v2830_v13 = vpop.permute.xlu1 %178 }
  0x9b   :  { %1493 = vperm.xlu1 %2243, %v1407_v42   ;;  %1488 = vperm.xlu0 %2242, %v1406_v43  }
  0x9e   :  { %v2832_v14 = vpop.permute.xlu0 %183  ;;  %v2834_v15 = vpop.permute.xlu1 %188 }
  0x9f   :  { %1503 = vperm.xlu1 %2243, %v1409_v44   ;;  %1498 = vperm.xlu0 %2242, %v1408_v45  }
  0xa2   :  { %v194_v16 = vpop.permute.xlu0 %193  ;;  %v199_v22 = vpop.permute.xlu1 %198 }
  0xa3   :  { %1513 = vperm.xlu1 %2243, %v1411_v46   ;;  %1508 = vperm.xlu0 %2242, %v1410_v47  }
  0xa6   :  { %v204_v39 = vpop.permute.xlu0 %203 }
  0xa7   :  { %1523 = vperm.xlu1 %2243, %v1413_v48   ;;  %1518 = vperm.xlu0 %2242, %v1412_v49  }
  0xab   :  { %1533 = vperm.xlu1 %2243, %v1415_v50   ;;  %1528 = vperm.xlu0 %2242, %v1414_v51  }
  0xaf   :  { %1543 = vperm.xlu1 %2243, %v1417_v52   ;;  %1538 = vperm.xlu0 %2242, %v1416_v53   ;;  %v209_v52 = vpop.permute.xlu1 %208 }
  0xb3   :  { %1553 = vperm.xlu1 %2243, %v1419_v55   ;;  %1548 = vperm.xlu0 %2242, %v1418_v56  }
  0xb7   :  { %1563 = vperm.xlu1 %2243, %v1421_v58   ;;  %1558 = vperm.xlu0 %2242, %v1420_v59  }
  0xbb   :  { %1573 = vperm.xlu1 %2243, %v1423_v62   ;;  %1568 = vperm.xlu0 %2242, %v1422_v63  }
  0xbf   :  { %1583 = vperm.xlu1 %2243, %v1425_v1   ;;  %1578 = vperm.xlu0 %2242, %v1424_v2  }
  0xc3   :  { %2039 = vperm.xlu0 %2242, %v2036_v4  }
  0xe0   :  { %v434_v17 = vpop.f32.mrb[0].mxu0  ;;  %v514_v18 = vpop.f32.mrb[0].mxu1 }
  0xe1   :  { %v436_v19 = vpop.f32.mrb[1].mxu0  ;;  %v515_v20 = vadd.f32 %v514_v18, %v194_v16  ;;  %v516_v21 = vpop.f32.mrb[1].mxu1  ;;  %v435_v23 = vadd.f32 %v434_v17, %v114_v54 }
  0xe2   :  { %v517_v24 = vadd.f32 %v516_v21, %v194_v16  ;;  %v437_v25 = vadd.f32 %v436_v19, %v114_v54  ;;  %v438_v26 = vpop.f32.mrb[2].mxu0  ;;  %v518_v27 = vpop.f32.mrb[2].mxu1 }
  0xe3   :  { %v439_v28 = vadd.f32 %v438_v26, %v119_v60  ;;  %v440_v29 = vpop.f32.mrb[3].mxu0  ;;  %v625_v30 = vmax.f32 %v515_v20, 0.0  ;;  %v519_v31 = vadd.f32 %v518_v27, %v199_v22  ;;  %v520_v32 = vpop.f32.mrb[3].mxu1  ;;  %v593_v36 = vmax.f32 %v435_v23, 0.0 }
  0xe4   :  { %v441_v33 = vadd.f32 %v440_v29, %v119_v60  ;;  %v626_v34 = vmax.f32 %v517_v24, 0.0  ;;  %v521_v35 = vadd.f32 %v520_v32, %v199_v22  ;;  %v594_v40 = vmax.f32 %v437_v25, 0.0  ;;  %v214_v19 = vpop.permute.xlu0 %213 }
  0xe5   :  { %v595_v37 = vmax.f32 %v439_v28, 0.0  ;;  %v627_v38 = vmax.f32 %v519_v31, 0.0 }
  0xe6   :  { %v596_v41 = vmax.f32 %v441_v33, 0.0  ;;  %v628_v42 = vmax.f32 %v521_v35, 0.0 }
  0xe7   :  { %v657_v43 = vpack.c.bf16 %v595_v37, %v593_v36  ;;  %v2836_v45 = vpack.c.bf16 %v627_v38, %v625_v30  ;;  %v219_v30 = vpop.permute.xlu1 %218 }
  0xe8   :  { %v444_v44 = vpop.f32.mrb[4].mxu0  ;;  %v524_v46 = vpop.f32.mrb[4].mxu1  ;;  %v658_v47 = vpack.c.bf16 %v596_v41, %v594_v40  ;;  %v2838_v49 = vpack.c.bf16 %v628_v42, %v626_v34 }
  0xe9   :  { %v446_v48 = vpop.f32.mrb[5].mxu0  ;;  %v525_v50 = vadd.f32 %v524_v46, %v204_v39  ;;  %v526_v51 = vpop.f32.mrb[5].mxu1  ;;  %v445_v53 = vadd.f32 %v444_v44, %v2787_v57 }
  0xea   :  { %v527_v54 = vadd.f32 %v526_v51, %v204_v39  ;;  %v447_v55 = vadd.f32 %v446_v48, %v2787_v57  ;;  %v448_v56 = vpop.f32.mrb[6].mxu0  ;;  %1073 = vmatprep.subr.bf16.mxu1 %v658_v47  ;;  %v528_v58 = vpop.f32.mrb[6].mxu1 }
  0xeb   :  { %v449_v59 = vadd.f32 %v448_v56, %v2795_v61  ;;  %v450_v60 = vpop.f32.mrb[7].mxu0  ;;  %1074 = vmatpush1.bf16.msra.mxu1 %v657_v43  ;;  %v629_v62 = vmax.f32 %v525_v50, 0.0  ;;  %v529_v63 = vadd.f32 %v528_v58, %v209_v52  ;;  %v530_v1 = vpop.f32.mrb[7].mxu1  ;;  %v597_v16 = vmax.f32 %v445_v53, 0.0 }
  0xec   :  { %v451_v2 = vadd.f32 %v450_v60, %v2795_v61  ;;  %v630_v4 = vmax.f32 %v527_v54, 0.0  ;;  %v531_v7 = vadd.f32 %v530_v1, %v209_v52  ;;  %v598_v20 = vmax.f32 %v447_v55, 0.0  ;;  %v224_v48 = vpop.permute.xlu0 %223 }
  0xed   :  { %v599_v17 = vmax.f32 %v449_v59, 0.0  ;;  %v631_v18 = vmax.f32 %v529_v63, 0.0 }
  0xee   :  { %v600_v57 = vmax.f32 %v451_v2, 0.0  ;;  %v632_v21 = vmax.f32 %v531_v7, 0.0 }
  0xef   :  { %v659_v22 = vpack.c.bf16 %v599_v17, %v597_v16  ;;  %v2844_v24 = vpack.c.bf16 %v631_v18, %v629_v62  ;;  %v229_v62 = vpop.permute.xlu1 %228 }
  0xf0   :  { %v454_v23 = vpop.f32.mrb[8].mxu0  ;;  %v534_v25 = vpop.f32.mrb[8].mxu1  ;;  %v660_v26 = vpack.c.bf16 %v600_v57, %v598_v20  ;;  %v2846_v28 = vpack.c.bf16 %v632_v21, %v630_v4 }
  0xf1   :  { %v456_v27 = vpop.f32.mrb[9].mxu0  ;;  %v535_v29 = vadd.f32 %v534_v25, %v214_v19  ;;  %v536_v61 = vpop.f32.mrb[9].mxu1  ;;  %v455_v31 = vadd.f32 %v454_v23, %v2803_v0 }
  0xf2   :  { %v537_v32 = vadd.f32 %v536_v61, %v214_v19  ;;  %v457_v33 = vadd.f32 %v456_v27, %v2803_v0  ;;  %v458_v34 = vpop.f32.mrb[10].mxu0  ;;  %1075 = vmatprep.subr.bf16.mxu1 %v660_v26  ;;  %v538_v35 = vpop.f32.mrb[10].mxu1 }
  0xf3   :  { %v459_v36 = vadd.f32 %v458_v34, %v2811_v3  ;;  %v460_v37 = vpop.f32.mrb[11].mxu0  ;;  %1076 = vmatpush1.bf16.msra.mxu1 %v659_v22  ;;  %v633_v38 = vmax.f32 %v535_v29, 0.0  ;;  %v539_v39 = vadd.f32 %v538_v35, %v219_v30  ;;  %v540_v40 = vpop.f32.mrb[11].mxu1  ;;  %v601_v44 = vmax.f32 %v455_v31, 0.0 }
  0xf4   :  { %v461_v41 = vadd.f32 %v460_v37, %v2811_v3  ;;  %v634_v42 = vmax.f32 %v537_v32, 0.0  ;;  %v541_v43 = vadd.f32 %v540_v40, %v219_v30  ;;  %v602_v50 = vmax.f32 %v457_v33, 0.0  ;;  %v234_v27 = vpop.permute.xlu0 %233 }
  0xf5   :  { %v603_v46 = vmax.f32 %v459_v36, 0.0  ;;  %v635_v47 = vmax.f32 %v539_v39, 0.0 }
  0xf6   :  { %v604_v0 = vmax.f32 %v461_v41, 0.0  ;;  %v636_v51 = vmax.f32 %v541_v43, 0.0 }
  0xf7   :  { %v661_v52 = vpack.c.bf16 %v603_v46, %v601_v44  ;;  %v2852_v53 = vpack.c.bf16 %v635_v47, %v633_v38  ;;  %v239_v38 = vpop.permute.xlu1 %238 }
  0xf8   :  { %v464_v54 = vpop.f32.mrb[12].mxu0  ;;  %v544_v55 = vpop.f32.mrb[12].mxu1  ;;  %v662_v56 = vpack.c.bf16 %v604_v0, %v602_v50  ;;  %v2854_v58 = vpack.c.bf16 %v636_v51, %v634_v42 }
  0xf9   :  { %v545_v59 = vadd.f32 %v544_v55, %v224_v48  ;;  %v466_v60 = vpop.f32.mrb[13].mxu0  ;;  %v546_v3 = vpop.f32.mrb[13].mxu1  ;;  %v465_v63 = vadd.f32 %v464_v54, %v2813_v5 }
  0xfa   :  { %v547_v1 = vadd.f32 %v546_v3, %v224_v48  ;;  %v467_v2 = vadd.f32 %v466_v60, %v2813_v5  ;;  %v468_v4 = vpop.f32.mrb[14].mxu0  ;;  %v548_v7 = vpop.f32.mrb[14].mxu1  ;;  %1077 = vmatprep.subr.bf16.mxu1 %v662_v56 }
  0xfb   :  { %v637_v16 = vmax.f32 %v545_v59, 0.0  ;;  %v469_v17 = vadd.f32 %v468_v4, %v2815_v6  ;;  %v549_v18 = vadd.f32 %v548_v7, %v229_v62  ;;  %v470_v19 = vpop.f32.mrb[15].mxu0  ;;  %v550_v20 = vpop.f32.mrb[15].mxu1  ;;  %1078 = vmatpush1.bf16.msra.mxu1 %v661_v52  ;;  %v605_v23 = vmax.f32 %v465_v63, 0.0 }
  0xfc   :  { %v638_v57 = vmax.f32 %v547_v1, 0.0  ;;  %v471_v21 = vadd.f32 %v470_v19, %v2815_v6  ;;  %v551_v22 = vadd.f32 %v550_v20, %v229_v62  ;;  %v606_v29 = vmax.f32 %v467_v2, 0.0  ;;  %v244_v56 = vpop.permute.xlu0 %243 }
  0xfd   :  { %v607_v25 = vmax.f32 %v469_v17, 0.0  ;;  %v639_v26 = vmax.f32 %v549_v18, 0.0  ;;  %v249_v17 = vpop.permute.xlu1 %248 }
  0xfe   :  { %v608_v5 = vmax.f32 %v471_v21, 0.0  ;;  %v640_v61 = vmax.f32 %v551_v22, 0.0 }
  0xff   :  { %v663_v30 = vpack.c.bf16 %v607_v25, %v605_v23  ;;  %v2860_v31 = vpack.c.bf16 %v639_v26, %v637_v16 }
 0x100   :  { %v474_v32 = vpop.f32.mrb[16].mxu0  ;;  %v554_v33 = vpop.f32.mrb[16].mxu1  ;;  %v664_v34 = vpack.c.bf16 %v608_v5, %v606_v29  ;;  %v2862_v35 = vpack.c.bf16 %v640_v61, %v638_v57 }
 0x101   :  { %v476_v36 = vpop.f32.mrb[17].mxu0  ;;  %v556_v37 = vpop.f32.mrb[17].mxu1  ;;  %v475_v6 = vadd.f32 %v474_v32, %v2820_v8  ;;  %v555_v39 = vadd.f32 %v554_v33, %v234_v27 }
 0x102   :  { %v477_v40 = vadd.f32 %v476_v36, %v2820_v8  ;;  %v557_v41 = vadd.f32 %v556_v37, %v234_v27  ;;  %v478_v42 = vpop.f32.mrb[18].mxu0  ;;  %v558_v43 = vpop.f32.mrb[18].mxu1  ;;  %1079 = vmatprep.subr.bf16.mxu1 %v664_v34 }
 0x103   :  { %v479_v44 = vadd.f32 %v478_v42, %v2822_v9  ;;  %v559_v46 = vadd.f32 %v558_v43, %v239_v38  ;;  %v480_v47 = vpop.f32.mrb[19].mxu0  ;;  %v560_v48 = vpop.f32.mrb[19].mxu1  ;;  %1080 = vmatpush1.bf16.msra.mxu1 %v663_v30  ;;  %v609_v51 = vmax.f32 %v475_v6, 0.0  ;;  %v641_v52 = vmax.f32 %v555_v39, 0.0 }
 0x104   :  { %v481_v50 = vadd.f32 %v480_v47, %v2822_v9  ;;  %v561_v0 = vadd.f32 %v560_v48, %v239_v38  ;;  %v610_v59 = vmax.f32 %v477_v40, 0.0  ;;  %v642_v8 = vmax.f32 %v557_v41, 0.0  ;;  %v254_v34 = vpop.permute.xlu0 %253 }
 0x105   :  { %v611_v54 = vmax.f32 %v479_v44, 0.0  ;;  %v643_v55 = vmax.f32 %v559_v46, 0.0  ;;  %v259_v46 = vpop.permute.xlu1 %258 }
 0x106   :  { %v612_v60 = vmax.f32 %v481_v50, 0.0  ;;  %v644_v3 = vmax.f32 %v561_v0, 0.0 }
 0x107   :  { %v665_v62 = vpack.c.bf16 %v611_v54, %v609_v51  ;;  %v2868_v63 = vpack.c.bf16 %v643_v55, %v641_v52 }
 0x108   :  { %v484_v1 = vpop.f32.mrb[20].mxu0  ;;  %v564_v2 = vpop.f32.mrb[20].mxu1  ;;  %v666_v4 = vpack.c.bf16 %v612_v60, %v610_v59  ;;  %v2870_v7 = vpack.c.bf16 %v644_v3, %v642_v8 }
 0x109   :  { %v486_v16 = vpop.f32.mrb[21].mxu0  ;;  %v566_v9 = vpop.f32.mrb[21].mxu1  ;;  %v485_v18 = vadd.f32 %v484_v1, %v2824_v10  ;;  %v565_v19 = vadd.f32 %v564_v2, %v244_v56 }
 0x10a   :  { %v487_v20 = vadd.f32 %v486_v16, %v2824_v10  ;;  %v567_v57 = vadd.f32 %v566_v9, %v244_v56  ;;  %v488_v21 = vpop.f32.mrb[22].mxu0  ;;  %v568_v22 = vpop.f32.mrb[22].mxu1  ;;  %1081 = vmatprep.subr.bf16.mxu1 %v666_v4 }
 0x10b   :  { %v489_v23 = vadd.f32 %v488_v21, %v2826_v11  ;;  %v569_v25 = vadd.f32 %v568_v22, %v249_v17  ;;  %v490_v26 = vpop.f32.mrb[23].mxu0  ;;  %v570_v27 = vpop.f32.mrb[23].mxu1  ;;  %1082 = vmatpush1.bf16.msra.mxu1 %v665_v62  ;;  %v613_v61 = vmax.f32 %v485_v18, 0.0  ;;  %v645_v30 = vmax.f32 %v565_v19, 0.0 }
 0x10c   :  { %v491_v29 = vadd.f32 %v490_v26, %v2826_v11  ;;  %v571_v5 = vadd.f32 %v570_v27, %v249_v17  ;;  %v614_v36 = vmax.f32 %v487_v20, 0.0  ;;  %v646_v10 = vmax.f32 %v567_v57, 0.0  ;;  %v264_v4 = vpop.permute.xlu0 %263  ;;  %v269_v26 = vpop.permute.xlu1 %268 }
 0x10d   :  { %v615_v32 = vmax.f32 %v489_v23, 0.0  ;;  %v647_v33 = vmax.f32 %v569_v25, 0.0 }
 0x10e   :  { %v616_v37 = vmax.f32 %v491_v29, 0.0  ;;  %v648_v38 = vmax.f32 %v571_v5, 0.0 }
 0x10f   :  { %v667_v6 = vpack.c.bf16 %v615_v32, %v613_v61  ;;  %v2876_v39 = vpack.c.bf16 %v647_v33, %v645_v30 }
 0x110   :  { %v494_v40 = vpop.f32.mrb[24].mxu0  ;;  %v574_v41 = vpop.f32.mrb[24].mxu1  ;;  %v668_v42 = vpack.c.bf16 %v616_v37, %v614_v36  ;;  %v2878_v43 = vpack.c.bf16 %v648_v38, %v646_v10 }
 0x111   :  { %v496_v44 = vpop.f32.mrb[25].mxu0  ;;  %v576_v11 = vpop.f32.mrb[25].mxu1  ;;  %v495_v47 = vadd.f32 %v494_v40, %v2828_v12  ;;  %v575_v48 = vadd.f32 %v574_v41, %v254_v34 }
 0x112   :  { %v497_v50 = vadd.f32 %v496_v44, %v2828_v12  ;;  %v577_v0 = vadd.f32 %v576_v11, %v254_v34  ;;  %v498_v51 = vpop.f32.mrb[26].mxu0  ;;  %v578_v52 = vpop.f32.mrb[26].mxu1  ;;  %1083 = vmatprep.subr.bf16.mxu1 %v668_v42 }
 0x113   :  { %v499_v54 = vadd.f32 %v498_v51, %v2830_v13  ;;  %v579_v55 = vadd.f32 %v578_v52, %v259_v46  ;;  %v500_v56 = vpop.f32.mrb[27].mxu0  ;;  %v580_v59 = vpop.f32.mrb[27].mxu1  ;;  %1084 = vmatpush1.bf16.msra.mxu1 %v667_v6  ;;  %v617_v3 = vmax.f32 %v495_v47, 0.0  ;;  %v649_v62 = vmax.f32 %v575_v48, 0.0  ;;  %v2283_v51 = vld [vmem:[%s3118_s3 + $0x70] ss:$8 sps:$4 sm:$0xff]  }
 0x114   :  { %v501_v8 = vadd.f32 %v500_v56, %v2830_v13  ;;  %v581_v60 = vadd.f32 %v580_v59, %v259_v46  ;;  %v618_v16 = vmax.f32 %v497_v50, 0.0  ;;  %v650_v12 = vmax.f32 %v577_v0, 0.0  ;;  %v2281_v0 = vld [vmem:[%s3118_s3 + $0x74] ss:$8 sps:$4 sm:$0xff]   ;;  %v2284_v52 = vld [vmem:[%s3118_s3 + $0x84] ss:$8 sps:$4 sm:$0xff]  }
 0x115   :  { %v619_v1 = vmax.f32 %v499_v54, 0.0  ;;  %v651_v2 = vmax.f32 %v579_v55, 0.0  ;;  %v2286_v54 = vld [vmem:[%s3118_s3 + $0x80] ss:$8 sps:$4 sm:$0xff]   ;;  %v2287_v55 = vld [vmem:[%s3118_s3 + $0x94] ss:$8 sps:$4 sm:$0xff]  }
 0x116   :  { %v620_v9 = vmax.f32 %v501_v8, 0.0  ;;  %v652_v17 = vmax.f32 %v581_v60, 0.0  ;;  %v2289_v56 = vld [vmem:[%s3118_s3 + $0x90] ss:$8 sps:$4 sm:$0xff]   ;;  %v2290_v59 = vld [vmem:[%s3118_s3 + $0xa4] ss:$8 sps:$4 sm:$0xff]  }
 0x117   :  { %v669_v18 = vpack.c.bf16 %v619_v1, %v617_v3  ;;  %v685_v19 = vpack.c.bf16 %v651_v2, %v649_v62  ;;  %v2292_v8 = vld [vmem:[%s3118_s3 + $0xa0] ss:$8 sps:$4 sm:$0xff]   ;;  %v2293_v60 = vld [vmem:[%s3118_s3 + $0xb4] ss:$8 sps:$4 sm:$0xff]   ;;  %v2295_v3 = vld [vmem:[%s3118_s3 + $0xb0] ss:$8 sps:$4 sm:$0xff]  }
 0x118   :  { %v504_v20 = vpop.f32.mrb[28].mxu0  ;;  %v584_v57 = vpop.f32.mrb[28].mxu1  ;;  %v670_v21 = vpack.c.bf16 %v620_v9, %v618_v16  ;;  %v686_v22 = vpack.c.bf16 %v652_v17, %v650_v12  ;;  %v2296_v62 = vld [vmem:[%s3118_s3 + $0xc4] ss:$8 sps:$4 sm:$0xff]   ;;  %v2298_v1 = vld [vmem:[%s3118_s3 + $0xc0] ss:$8 sps:$4 sm:$0xff]  }
 0x119   :  { %v506_v23 = vpop.f32.mrb[29].mxu0  ;;  %v586_v25 = vpop.f32.mrb[29].mxu1  ;;  %v505_v13 = vadd.f32 %v504_v20, %v2832_v14  ;;  %v585_v27 = vadd.f32 %v584_v57, %v264_v4  ;;  %v2299_v2 = vld [vmem:[%s3118_s3 + $0xd4] ss:$8 sps:$4 sm:$0xff]   ;;  %v2302_v16 = vld [vmem:[%s3118_s3 + $0xe4] ss:$8 sps:$4 sm:$0xff]  }
 0x11a   :  { %v507_v29 = vadd.f32 %v506_v23, %v2832_v14  ;;  %v587_v5 = vadd.f32 %v586_v25, %v264_v4  ;;  %v508_v61 = vpop.f32.mrb[30].mxu0  ;;  %v588_v30 = vpop.f32.mrb[30].mxu1  ;;  %1085 = vmatprep.subr.bf16.mxu1 %v670_v21  ;;  %v2301_v4 = vld [vmem:[%s3118_s3 + $0xd0] ss:$8 sps:$4 sm:$0xff]   ;;  %v2304_v12 = vld [vmem:[%s3118_s3 + $0xe0] ss:$8 sps:$4 sm:$0xff]  }
 0x11b   :  { %v509_v32 = vadd.f32 %v508_v61, %v2834_v15  ;;  %v589_v33 = vadd.f32 %v588_v30, %v269_v26  ;;  %v510_v34 = vpop.f32.mrb[31].mxu0  ;;  %v590_v36 = vpop.f32.mrb[31].mxu1  ;;  %1086 = vmatpush1.bf16.msra.mxu1 %v669_v18  ;;  %v621_v38 = vmax.f32 %v505_v13, 0.0  ;;  %v653_v6 = vmax.f32 %v585_v27, 0.0  ;;  %v2305_v9 = vld [vmem:[%s3118_s3 + $0xf4] ss:$8 sps:$4 sm:$0xff]  }
 0x11c   :  { %v511_v10 = vadd.f32 %v510_v34, %v2834_v15  ;;  %v591_v37 = vadd.f32 %v590_v36, %v269_v26  ;;  %v622_v42 = vmax.f32 %v507_v29, 0.0  ;;  %v654_v44 = vmax.f32 %v587_v5, 0.0  ;;  %v2260_v15 = vld [vmem:[%s3118_s3] ss:$8 sps:$4 sm:$0xff]   ;;  %v2307_v17 = vld [vmem:[%s3118_s3 + $0xf0] ss:$8 sps:$4 sm:$0xff]   ;;  %v756_v18 = vpop.permute.xlu0 %755  ;;  %v761_v21 = vpop.permute.xlu1 %760 }
 0x11d   :  { %v623_v40 = vmax.f32 %v509_v32, 0.0  ;;  %v655_v41 = vmax.f32 %v589_v33, 0.0  ;;  %v2310_v27 = vld [vmem:[%s3119_s5 + $0x4] ss:$8 sps:$4 sm:$0xff]  }
 0x11e   :  { %v624_v14 = vmax.f32 %v511_v10, 0.0  ;;  %v656_v11 = vmax.f32 %v591_v37, 0.0  ;;  %1778 = vmatprep.mubr.bf16.mxu0 %v2310_v27 }
 0x11f   :  { %v671_v46 = vpack.c.bf16 %v623_v40, %v621_v38  ;;  %v687_v47 = vpack.c.bf16 %v655_v41, %v653_v6 }
 0x120   :  { %v672_v48 = vpack.c.bf16 %v624_v14, %v622_v42  ;;  %v688_v50 = vpack.c.bf16 %v656_v11, %v654_v44  ;;  %v766_v33 = vpop.permute.xlu0 %765  ;;  %v771_v38 = vpop.permute.xlu1 %770 }
 0x122   :  { %1087 = vmatprep.subr.bf16.mxu1 %v672_v48 }
 0x123   :  { %1088 = vmatpush1.bf16.msra.mxu1 %v671_v46 }
 0x124   :  { %1089 = vmatprep.subr.bf16.mxu1 %v2838_v49  ;;  %v2265_v49 = vld [vmem:[%s3118_s3 + $0x10] ss:$8 sps:$4 sm:$0xff]  }
 0x127   :  { %1090 = vmatpush1.bf16.msra.mxu1 %v2836_v45  ;;  %v2263_v45 = vld [vmem:[%s3118_s3 + $0x14] ss:$8 sps:$4 sm:$0xff]  }
 0x128   :  { %1091 = vmatprep.subr.bf16.mxu1 %v2846_v28  ;;  %v2268_v28 = vld [vmem:[%s3118_s3 + $0x20] ss:$8 sps:$4 sm:$0xff]  }
 0x12b   :  { %1092 = vmatpush1.bf16.msra.mxu1 %v2844_v24  ;;  %v2266_v24 = vld [vmem:[%s3118_s3 + $0x24] ss:$8 sps:$4 sm:$0xff]  }
 0x12c   :  { %1093 = vmatprep.subr.bf16.mxu1 %v2854_v58  ;;  %v2271_v58 = vld [vmem:[%s3118_s3 + $0x30] ss:$8 sps:$4 sm:$0xff]  }
 0x12f   :  { %1094 = vmatpush1.bf16.msra.mxu1 %v2852_v53  ;;  %v2269_v53 = vld [vmem:[%s3118_s3 + $0x34] ss:$8 sps:$4 sm:$0xff]  }
 0x130   :  { %1095 = vmatprep.subr.bf16.mxu1 %v2862_v35  ;;  %v2274_v35 = vld [vmem:[%s3118_s3 + $0x40] ss:$8 sps:$4 sm:$0xff]  }
 0x133   :  { %1096 = vmatpush1.bf16.msra.mxu1 %v2860_v31  ;;  %v2272_v31 = vld [vmem:[%s3118_s3 + $0x44] ss:$8 sps:$4 sm:$0xff]  }
 0x134   :  { %1097 = vmatprep.subr.bf16.mxu1 %v2870_v7  ;;  %v2277_v7 = vld [vmem:[%s3118_s3 + $0x50] ss:$8 sps:$4 sm:$0xff]  }
 0x137   :  { %1098 = vmatpush1.bf16.msra.mxu1 %v2868_v63  ;;  %v2275_v63 = vld [vmem:[%s3118_s3 + $0x54] ss:$8 sps:$4 sm:$0xff]  }
 0x138   :  { %1099 = vmatprep.subr.bf16.mxu1 %v2878_v43  ;;  %v2280_v43 = vld [vmem:[%s3118_s3 + $0x60] ss:$8 sps:$4 sm:$0xff]  }
 0x13b   :  { %1100 = vmatpush1.bf16.msra.mxu1 %v2876_v39  ;;  %v2278_v39 = vld [vmem:[%s3118_s3 + $0x64] ss:$8 sps:$4 sm:$0xff]  }
 0x13c   :  { %1101 = vmatprep.subr.bf16.mxu1 %v686_v22 }
 0x13f   :  { %1102 = vmatpush1.bf16.msra.mxu1 %v685_v19 }
 0x140   :  { %1103 = vmatprep.subr.bf16.mxu1 %v688_v50  ;;  %v776_v50 = vpop.permute.xlu0 %775 }
 0x143   :  { %1104 = vmatpush1.bf16.msra.mxu1 %v687_v47 }
 0x146   :  { %1106 = vmatmul.mubr.bf16.vlgmr.msra.gmra.mrb[32].mxu1 %v2260_v15 }
 0x147   :  { %1115 = vmatprep.mubr.bf16.mxu1 %v2263_v45 }
 0x14e   :  { %1116 = vmatmul.mubr.bf16.gmra.mrb[36].mxu1 %v2265_v49 }
 0x14f   :  { %1125 = vmatprep.mubr.bf16.mxu1 %v2266_v24 }
 0x156   :  { %1126 = vmatmul.mubr.bf16.gmra.mrb[40].mxu1 %v2268_v28  ;;  %v781_v28 = vpop.permute.xlu1 %780 }
 0x157   :  { %1135 = vmatprep.mubr.bf16.mxu1 %v2269_v53 }
 0x15e   :  { %1136 = vmatmul.mubr.bf16.gmra.mrb[44].mxu1 %v2271_v58 }
 0x15f   :  { %1145 = vmatprep.mubr.bf16.mxu1 %v2272_v31 }
 0x166   :  { %1146 = vmatmul.mubr.bf16.gmra.mrb[48].mxu1 %v2274_v35 }
 0x167   :  { %1155 = vmatprep.mubr.bf16.mxu1 %v2275_v63 }
 0x16e   :  { %1156 = vmatmul.mubr.bf16.gmra.mrb[52].mxu1 %v2277_v7 }
 0x16f   :  { %1165 = vmatprep.mubr.bf16.mxu1 %v2278_v39 }
 0x176   :  { %1166 = vmatmul.mubr.bf16.gmra.mrb[56].mxu1 %v2280_v43 }
 0x177   :  { %1175 = vmatprep.mubr.bf16.mxu1 %v2281_v0 }
 0x17e   :  { %1176 = vmatmul.mubr.bf16.gmra.mrb[60].mxu1 %v2283_v51 }
 0x17f   :  { %1185 = vmatprep.mubr.bf16.mxu1 %v2284_v52  ;;  %v786_v52 = vpop.permute.xlu0 %785 }
 0x186   :  { %1186 = vmatmul.mubr.bf16.gmra.mrb[64].mxu1 %v2286_v54 }
 0x187   :  { %1195 = vmatprep.mubr.bf16.mxu1 %v2287_v55 }
 0x18e   :  { %1196 = vmatmul.mubr.bf16.gmra.mrb[68].mxu1 %v2289_v56 }
 0x18f   :  { %1205 = vmatprep.mubr.bf16.mxu1 %v2290_v59 }
 0x196   :  { %1206 = vmatmul.mubr.bf16.gmra.mrb[72].mxu1 %v2292_v8  ;;  %v791_v8 = vpop.permute.xlu1 %790 }
 0x197   :  { %1215 = vmatprep.mubr.bf16.mxu1 %v2293_v60 }
 0x19e   :  { %1216 = vmatmul.mubr.bf16.gmra.mrb[76].mxu1 %v2295_v3 }
 0x19f   :  { %1225 = vmatprep.mubr.bf16.mxu1 %v2296_v62 }
 0x1a6   :  { %1226 = vmatmul.mubr.bf16.gmra.mrb[80].mxu1 %v2298_v1 }
 0x1a7   :  { %1235 = vmatprep.mubr.bf16.mxu1 %v2299_v2 }
 0x1ae   :  { %1236 = vmatmul.mubr.bf16.gmra.mrb[84].mxu1 %v2301_v4 }
 0x1af   :  { %1245 = vmatprep.mubr.bf16.mxu1 %v2302_v16 }
 0x1b6   :  { %1246 = vmatmul.mubr.bf16.gmra.mrb[88].mxu1 %v2304_v12 }
 0x1b7   :  { %1255 = vmatprep.mubr.bf16.mxu1 %v2305_v9 }
 0x1be   :  { %1256 = vmatmul.mubr.bf16.gmra.mrb[92].mxu1 %v2307_v17 }
 0x219   :  { %v1107_v19 = vpop.f32.mrb[32].mxu1 }
 0x21a   :  { %v1108_v20 = vadd.f32 %v1107_v19, %v756_v18  ;;  %v1109_v57 = vpop.f32.mrb[33].mxu1 }
 0x21b   :  { %v1110_v22 = vadd.f32 %v1109_v57, %v756_v18  ;;  %v1111_v23 = vpop.f32.mrb[34].mxu1  ;;  %v796_v18 = vpop.permute.xlu0 %795 }
 0x21c   :  { %v1112_v25 = vadd.f32 %v1111_v23, %v761_v21  ;;  %v1113_v26 = vpop.f32.mrb[35].mxu1  ;;  %v1266_v29 = vmax.f32 %v1108_v20, 0.0 }
 0x21d   :  { %v1114_v13 = vadd.f32 %v1113_v26, %v761_v21  ;;  %v1267_v61 = vmax.f32 %v1110_v22, 0.0  ;;  %v801_v22 = vpop.permute.xlu1 %800 }
 0x21e   :  { %v1268_v5 = vmax.f32 %v1112_v25, 0.0 }
 0x21f   :  { %v1269_v30 = vmax.f32 %v1114_v13, 0.0 }
 0x220   :  { %v1330_v32 = vpack.c.bf16 %v1268_v5, %v1266_v29 }
 0x221   :  { %v1331_v34 = vpack.c.bf16 %v1269_v30, %v1267_v61  ;;  %v1117_v36 = vpop.f32.mrb[36].mxu1 }
 0x222   :  { %v1118_v10 = vadd.f32 %v1117_v36, %v766_v33  ;;  %v1119_v37 = vpop.f32.mrb[37].mxu1 }
 0x223   :  { %v1120_v6 = vadd.f32 %v1119_v37, %v766_v33  ;;  %v1121_v40 = vpop.f32.mrb[38].mxu1  ;;  %1746 = vmatprep.subr.bf16.mxu0 %v1331_v34  ;;  %v806_v33 = vpop.permute.xlu0 %805 }
 0x224   :  { %v1122_v41 = vadd.f32 %v1121_v40, %v771_v38  ;;  %v1123_v42 = vpop.f32.mrb[39].mxu1  ;;  %1747 = vmatpush1.bf16.msra.mxu0 %v1330_v32  ;;  %v1270_v14 = vmax.f32 %v1118_v10, 0.0 }
 0x225   :  { %v1124_v44 = vadd.f32 %v1123_v42, %v771_v38  ;;  %v1271_v46 = vmax.f32 %v1120_v6, 0.0  ;;  %v811_v38 = vpop.permute.xlu1 %810 }
 0x226   :  { %v1272_v11 = vmax.f32 %v1122_v41, 0.0 }
 0x227   :  { %v1273_v47 = vmax.f32 %v1124_v44, 0.0 }
 0x228   :  { %v1332_v48 = vpack.c.bf16 %v1272_v11, %v1270_v14 }
 0x229   :  { %v1333_v15 = vpack.c.bf16 %v1273_v47, %v1271_v46  ;;  %v1127_v45 = vpop.f32.mrb[40].mxu1 }
 0x22a   :  { %v1128_v49 = vadd.f32 %v1127_v45, %v776_v50  ;;  %v1129_v24 = vpop.f32.mrb[41].mxu1 }
 0x22b   :  { %v1130_v53 = vadd.f32 %v1129_v24, %v776_v50  ;;  %v1131_v58 = vpop.f32.mrb[42].mxu1  ;;  %1748 = vmatprep.subr.bf16.mxu0 %v1333_v15  ;;  %v816_v50 = vpop.permute.xlu0 %815 }
 0x22c   :  { %v1132_v31 = vadd.f32 %v1131_v58, %v781_v28  ;;  %v1133_v35 = vpop.f32.mrb[43].mxu1  ;;  %1749 = vmatpush1.bf16.msra.mxu0 %v1332_v48  ;;  %v1274_v7 = vmax.f32 %v1128_v49, 0.0 }
 0x22d   :  { %v1134_v63 = vadd.f32 %v1133_v35, %v781_v28  ;;  %v1275_v43 = vmax.f32 %v1130_v53, 0.0  ;;  %v821_v28 = vpop.permute.xlu1 %820 }
 0x22e   :  { %v1276_v39 = vmax.f32 %v1132_v31, 0.0 }
 0x22f   :  { %v1277_v0 = vmax.f32 %v1134_v63, 0.0 }
 0x230   :  { %v1334_v51 = vpack.c.bf16 %v1276_v39, %v1274_v7 }
 0x231   :  { %v1335_v54 = vpack.c.bf16 %v1277_v0, %v1275_v43  ;;  %v1137_v55 = vpop.f32.mrb[44].mxu1 }
 0x232   :  { %v1138_v56 = vadd.f32 %v1137_v55, %v786_v52  ;;  %v1139_v59 = vpop.f32.mrb[45].mxu1 }
 0x233   :  { %v1140_v60 = vadd.f32 %v1139_v59, %v786_v52  ;;  %v1141_v3 = vpop.f32.mrb[46].mxu1  ;;  %1750 = vmatprep.subr.bf16.mxu0 %v1335_v54  ;;  %v826_v52 = vpop.permute.xlu0 %825 }
 0x234   :  { %v1142_v62 = vadd.f32 %v1141_v3, %v791_v8  ;;  %v1143_v1 = vpop.f32.mrb[47].mxu1  ;;  %1751 = vmatpush1.bf16.msra.mxu0 %v1334_v51  ;;  %v1278_v4 = vmax.f32 %v1138_v56, 0.0 }
 0x235   :  { %v1144_v2 = vadd.f32 %v1143_v1, %v791_v8  ;;  %v1279_v12 = vmax.f32 %v1140_v60, 0.0  ;;  %v831_v8 = vpop.permute.xlu1 %830 }
 0x236   :  { %v1280_v16 = vmax.f32 %v1142_v62, 0.0 }
 0x237   :  { %v1281_v9 = vmax.f32 %v1144_v2, 0.0 }
 0x238   :  { %v1336_v17 = vpack.c.bf16 %v1280_v16, %v1278_v4 }
 0x239   :  { %v1337_v19 = vpack.c.bf16 %v1281_v9, %v1279_v12  ;;  %v1147_v20 = vpop.f32.mrb[48].mxu1 }
 0x23a   :  { %v1148_v57 = vadd.f32 %v1147_v20, %v796_v18  ;;  %v1149_v21 = vpop.f32.mrb[49].mxu1 }
 0x23b   :  { %v1150_v23 = vadd.f32 %v1149_v21, %v796_v18  ;;  %v1151_v25 = vpop.f32.mrb[50].mxu1  ;;  %1752 = vmatprep.subr.bf16.mxu0 %v1337_v19  ;;  %v836_v18 = vpop.permute.xlu0 %835 }
 0x23c   :  { %v1152_v26 = vadd.f32 %v1151_v25, %v801_v22  ;;  %v1153_v13 = vpop.f32.mrb[51].mxu1  ;;  %1753 = vmatpush1.bf16.msra.mxu0 %v1336_v17  ;;  %v1282_v29 = vmax.f32 %v1148_v57, 0.0 }
 0x23d   :  { %v1154_v27 = vadd.f32 %v1153_v13, %v801_v22  ;;  %v1283_v61 = vmax.f32 %v1150_v23, 0.0  ;;  %v841_v22 = vpop.permute.xlu1 %840 }
 0x23e   :  { %v1284_v5 = vmax.f32 %v1152_v26, 0.0 }
 0x23f   :  { %v1285_v30 = vmax.f32 %v1154_v27, 0.0 }
 0x240   :  { %v1338_v32 = vpack.c.bf16 %v1284_v5, %v1282_v29 }
 0x241   :  { %v1339_v34 = vpack.c.bf16 %v1285_v30, %v1283_v61  ;;  %v1157_v36 = vpop.f32.mrb[52].mxu1 }
 0x242   :  { %v1158_v10 = vadd.f32 %v1157_v36, %v806_v33  ;;  %v1159_v37 = vpop.f32.mrb[53].mxu1 }
 0x243   :  { %v1160_v6 = vadd.f32 %v1159_v37, %v806_v33  ;;  %v1161_v40 = vpop.f32.mrb[54].mxu1  ;;  %1754 = vmatprep.subr.bf16.mxu0 %v1339_v34  ;;  %v846_v33 = vpop.permute.xlu0 %845 }
 0x244   :  { %v1162_v41 = vadd.f32 %v1161_v40, %v811_v38  ;;  %v1163_v42 = vpop.f32.mrb[55].mxu1  ;;  %1755 = vmatpush1.bf16.msra.mxu0 %v1338_v32  ;;  %v1286_v14 = vmax.f32 %v1158_v10, 0.0 }
 0x245   :  { %v1164_v44 = vadd.f32 %v1163_v42, %v811_v38  ;;  %v1287_v46 = vmax.f32 %v1160_v6, 0.0  ;;  %v851_v38 = vpop.permute.xlu1 %850 }
 0x246   :  { %v1288_v11 = vmax.f32 %v1162_v41, 0.0 }
 0x247   :  { %v1289_v47 = vmax.f32 %v1164_v44, 0.0 }
 0x248   :  { %v1340_v48 = vpack.c.bf16 %v1288_v11, %v1286_v14 }
 0x249   :  { %v1341_v15 = vpack.c.bf16 %v1289_v47, %v1287_v46  ;;  %v1167_v45 = vpop.f32.mrb[56].mxu1 }
 0x24a   :  { %v1168_v49 = vadd.f32 %v1167_v45, %v816_v50  ;;  %v1169_v24 = vpop.f32.mrb[57].mxu1 }
 0x24b   :  { %v1170_v53 = vadd.f32 %v1169_v24, %v816_v50  ;;  %v1171_v58 = vpop.f32.mrb[58].mxu1  ;;  %1756 = vmatprep.subr.bf16.mxu0 %v1341_v15  ;;  %v856_v50 = vpop.permute.xlu0 %855 }
 0x24c   :  { %v1172_v31 = vadd.f32 %v1171_v58, %v821_v28  ;;  %v1173_v35 = vpop.f32.mrb[59].mxu1  ;;  %1757 = vmatpush1.bf16.msra.mxu0 %v1340_v48  ;;  %v1290_v7 = vmax.f32 %v1168_v49, 0.0 }
 0x24d   :  { %v1174_v63 = vadd.f32 %v1173_v35, %v821_v28  ;;  %v1291_v43 = vmax.f32 %v1170_v53, 0.0  ;;  %v861_v28 = vpop.permute.xlu1 %860 }
 0x24e   :  { %v1292_v39 = vmax.f32 %v1172_v31, 0.0 }
 0x24f   :  { %v1293_v0 = vmax.f32 %v1174_v63, 0.0 }
 0x250   :  { %v1342_v51 = vpack.c.bf16 %v1292_v39, %v1290_v7 }
 0x251   :  { %v1343_v54 = vpack.c.bf16 %v1293_v0, %v1291_v43  ;;  %v1177_v55 = vpop.f32.mrb[60].mxu1 }
 0x252   :  { %v1178_v56 = vadd.f32 %v1177_v55, %v826_v52  ;;  %v1179_v59 = vpop.f32.mrb[61].mxu1 }
 0x253   :  { %v1180_v60 = vadd.f32 %v1179_v59, %v826_v52  ;;  %v1181_v3 = vpop.f32.mrb[62].mxu1  ;;  %1758 = vmatprep.subr.bf16.mxu0 %v1343_v54  ;;  %v866_v52 = vpop.permute.xlu0 %865 }
 0x254   :  { %v1182_v62 = vadd.f32 %v1181_v3, %v831_v8  ;;  %v1183_v1 = vpop.f32.mrb[63].mxu1  ;;  %1759 = vmatpush1.bf16.msra.mxu0 %v1342_v51  ;;  %v1294_v4 = vmax.f32 %v1178_v56, 0.0 }
 0x255   :  { %v1184_v2 = vadd.f32 %v1183_v1, %v831_v8  ;;  %v1295_v12 = vmax.f32 %v1180_v60, 0.0  ;;  %v871_v8 = vpop.permute.xlu1 %870 }
 0x256   :  { %v1296_v16 = vmax.f32 %v1182_v62, 0.0 }
 0x257   :  { %v1297_v9 = vmax.f32 %v1184_v2, 0.0 }
 0x258   :  { %v1344_v17 = vpack.c.bf16 %v1296_v16, %v1294_v4 }
 0x259   :  { %v1345_v19 = vpack.c.bf16 %v1297_v9, %v1295_v12  ;;  %v1187_v20 = vpop.f32.mrb[64].mxu1 }
 0x25a   :  { %v1188_v57 = vadd.f32 %v1187_v20, %v836_v18  ;;  %v1189_v21 = vpop.f32.mrb[65].mxu1 }
 0x25b   :  { %v1190_v23 = vadd.f32 %v1189_v21, %v836_v18  ;;  %v1191_v25 = vpop.f32.mrb[66].mxu1  ;;  %1760 = vmatprep.subr.bf16.mxu0 %v1345_v19  ;;  %v876_v18 = vpop.permute.xlu0 %875 }
 0x25c   :  { %v1192_v26 = vadd.f32 %v1191_v25, %v841_v22  ;;  %v1193_v13 = vpop.f32.mrb[67].mxu1  ;;  %1761 = vmatpush1.bf16.msra.mxu0 %v1344_v17  ;;  %v1298_v29 = vmax.f32 %v1188_v57, 0.0 }
 0x25d   :  { %v1194_v27 = vadd.f32 %v1193_v13, %v841_v22  ;;  %v1299_v61 = vmax.f32 %v1190_v23, 0.0  ;;  %v881_v22 = vpop.permute.xlu1 %880 }
 0x25e   :  { %v1300_v5 = vmax.f32 %v1192_v26, 0.0 }
 0x25f   :  { %v1301_v30 = vmax.f32 %v1194_v27, 0.0 }
 0x260   :  { %v1346_v32 = vpack.c.bf16 %v1300_v5, %v1298_v29 }
 0x261   :  { %v1347_v34 = vpack.c.bf16 %v1301_v30, %v1299_v61  ;;  %v1197_v36 = vpop.f32.mrb[68].mxu1 }
 0x262   :  { %v1198_v10 = vadd.f32 %v1197_v36, %v846_v33  ;;  %v1199_v37 = vpop.f32.mrb[69].mxu1 }
 0x263   :  { %v1200_v6 = vadd.f32 %v1199_v37, %v846_v33  ;;  %v1201_v40 = vpop.f32.mrb[70].mxu1  ;;  %1762 = vmatprep.subr.bf16.mxu0 %v1347_v34  ;;  %v886_v33 = vpop.permute.xlu0 %885 }
 0x264   :  { %v1202_v41 = vadd.f32 %v1201_v40, %v851_v38  ;;  %v1203_v42 = vpop.f32.mrb[71].mxu1  ;;  %1763 = vmatpush1.bf16.msra.mxu0 %v1346_v32  ;;  %v1302_v14 = vmax.f32 %v1198_v10, 0.0 }
 0x265   :  { %v1204_v44 = vadd.f32 %v1203_v42, %v851_v38  ;;  %v1303_v46 = vmax.f32 %v1200_v6, 0.0  ;;  %v891_v38 = vpop.permute.xlu1 %890 }
 0x266   :  { %v1304_v11 = vmax.f32 %v1202_v41, 0.0 }
 0x267   :  { %v1305_v47 = vmax.f32 %v1204_v44, 0.0 }
 0x268   :  { %v1348_v48 = vpack.c.bf16 %v1304_v11, %v1302_v14 }
 0x269   :  { %v1349_v15 = vpack.c.bf16 %v1305_v47, %v1303_v46  ;;  %v1207_v45 = vpop.f32.mrb[72].mxu1 }
 0x26a   :  { %v1208_v49 = vadd.f32 %v1207_v45, %v856_v50  ;;  %v1209_v24 = vpop.f32.mrb[73].mxu1 }
 0x26b   :  { %v1210_v53 = vadd.f32 %v1209_v24, %v856_v50  ;;  %v1211_v58 = vpop.f32.mrb[74].mxu1  ;;  %1764 = vmatprep.subr.bf16.mxu0 %v1349_v15  ;;  %v896_v50 = vpop.permute.xlu0 %895 }
 0x26c   :  { %v1212_v31 = vadd.f32 %v1211_v58, %v861_v28  ;;  %v1213_v35 = vpop.f32.mrb[75].mxu1  ;;  %1765 = vmatpush1.bf16.msra.mxu0 %v1348_v48  ;;  %v1306_v7 = vmax.f32 %v1208_v49, 0.0 }
 0x26d   :  { %v1214_v63 = vadd.f32 %v1213_v35, %v861_v28  ;;  %v1307_v43 = vmax.f32 %v1210_v53, 0.0  ;;  %v901_v28 = vpop.permute.xlu1 %900 }
 0x26e   :  { %v1308_v39 = vmax.f32 %v1212_v31, 0.0 }
 0x26f   :  { %v1309_v0 = vmax.f32 %v1214_v63, 0.0 }
 0x270   :  { %v1350_v51 = vpack.c.bf16 %v1308_v39, %v1306_v7 }
 0x271   :  { %v1351_v54 = vpack.c.bf16 %v1309_v0, %v1307_v43  ;;  %v1217_v55 = vpop.f32.mrb[76].mxu1 }
 0x272   :  { %v1218_v56 = vadd.f32 %v1217_v55, %v866_v52  ;;  %v1219_v59 = vpop.f32.mrb[77].mxu1 }
 0x273   :  { %v1220_v60 = vadd.f32 %v1219_v59, %v866_v52  ;;  %v1221_v3 = vpop.f32.mrb[78].mxu1  ;;  %1766 = vmatprep.subr.bf16.mxu0 %v1351_v54  ;;  %v906_v52 = vpop.permute.xlu0 %905 }
 0x274   :  { %v1222_v62 = vadd.f32 %v1221_v3, %v871_v8  ;;  %v1223_v1 = vpop.f32.mrb[79].mxu1  ;;  %1767 = vmatpush1.bf16.msra.mxu0 %v1350_v51  ;;  %v1310_v4 = vmax.f32 %v1218_v56, 0.0 }
 0x275   :  { %v1224_v2 = vadd.f32 %v1223_v1, %v871_v8  ;;  %v1311_v12 = vmax.f32 %v1220_v60, 0.0  ;;  %v911_v8 = vpop.permute.xlu1 %910 }
 0x276   :  { %v1312_v16 = vmax.f32 %v1222_v62, 0.0 }
 0x277   :  { %v1313_v9 = vmax.f32 %v1224_v2, 0.0 }
 0x278   :  { %v1352_v17 = vpack.c.bf16 %v1312_v16, %v1310_v4 }
 0x279   :  { %v1353_v19 = vpack.c.bf16 %v1313_v9, %v1311_v12  ;;  %v1227_v20 = vpop.f32.mrb[80].mxu1 }
 0x27a   :  { %v1228_v57 = vadd.f32 %v1227_v20, %v876_v18  ;;  %v1229_v21 = vpop.f32.mrb[81].mxu1  ;;  %v2311_v20 = vld [vmem:[%s3119_s5 + $0x14] ss:$8 sps:$4 sm:$0xff]  }
 0x27b   :  { %v1230_v23 = vadd.f32 %v1229_v21, %v876_v18  ;;  %v1231_v25 = vpop.f32.mrb[82].mxu1  ;;  %1768 = vmatprep.subr.bf16.mxu0 %v1353_v19  ;;  %v2308_v19 = vld [vmem:[%s3119_s5] ss:$8 sps:$4 sm:$0xff]   ;;  %v2314_v21 = vld [vmem:[%s3119_s5 + $0x24] ss:$8 sps:$4 sm:$0xff]  }
 0x27c   :  { %v1232_v26 = vadd.f32 %v1231_v25, %v881_v22  ;;  %v1233_v13 = vpop.f32.mrb[83].mxu1  ;;  %1769 = vmatpush1.bf16.msra.mxu0 %v1352_v17  ;;  %v1314_v29 = vmax.f32 %v1228_v57, 0.0  ;;  %v2313_v57 = vld [vmem:[%s3119_s5 + $0x10] ss:$8 sps:$4 sm:$0xff]  }
 0x27d   :  { %v1234_v27 = vadd.f32 %v1233_v13, %v881_v22  ;;  %v1315_v61 = vmax.f32 %v1230_v23, 0.0  ;;  %v2316_v22 = vld [vmem:[%s3119_s5 + $0x20] ss:$8 sps:$4 sm:$0xff]   ;;  %v2317_v23 = vld [vmem:[%s3119_s5 + $0x34] ss:$8 sps:$4 sm:$0xff]  }
 0x27e   :  { %v1316_v5 = vmax.f32 %v1232_v26, 0.0  ;;  %v2319_v25 = vld [vmem:[%s3119_s5 + $0x30] ss:$8 sps:$4 sm:$0xff]   ;;  %v2320_v26 = vld [vmem:[%s3119_s5 + $0x44] ss:$8 sps:$4 sm:$0xff]  }
 0x27f   :  { %v1317_v30 = vmax.f32 %v1234_v27, 0.0  ;;  %v2322_v13 = vld [vmem:[%s3119_s5 + $0x40] ss:$8 sps:$4 sm:$0xff]   ;;  %v2323_v27 = vld [vmem:[%s3119_s5 + $0x54] ss:$8 sps:$4 sm:$0xff]  }
 0x280   :  { %v1354_v32 = vpack.c.bf16 %v1316_v5, %v1314_v29  ;;  %v2325_v29 = vld [vmem:[%s3119_s5 + $0x50] ss:$8 sps:$4 sm:$0xff]   ;;  %v2326_v5 = vld [vmem:[%s3119_s5 + $0x64] ss:$8 sps:$4 sm:$0xff]  }
 0x281   :  { %v1355_v34 = vpack.c.bf16 %v1317_v30, %v1315_v61  ;;  %v1237_v36 = vpop.f32.mrb[84].mxu1  ;;  %v2328_v61 = vld [vmem:[%s3119_s5 + $0x60] ss:$8 sps:$4 sm:$0xff]   ;;  %v2329_v30 = vld [vmem:[%s3119_s5 + $0x74] ss:$8 sps:$4 sm:$0xff]  }
 0x282   :  { %v1238_v10 = vadd.f32 %v1237_v36, %v886_v33  ;;  %v1239_v37 = vpop.f32.mrb[85].mxu1  ;;  %v2335_v36 = vld [vmem:[%s3119_s5 + $0x94] ss:$8 sps:$4 sm:$0xff]  }
 0x283   :  { %v1240_v6 = vadd.f32 %v1239_v37, %v886_v33  ;;  %v1241_v40 = vpop.f32.mrb[86].mxu1  ;;  %1770 = vmatprep.subr.bf16.mxu0 %v1355_v34  ;;  %v2332_v33 = vld [vmem:[%s3119_s5 + $0x84] ss:$8 sps:$4 sm:$0xff]   ;;  %v2334_v34 = vld [vmem:[%s3119_s5 + $0x80] ss:$8 sps:$4 sm:$0xff]  }
 0x284   :  { %v1242_v41 = vadd.f32 %v1241_v40, %v891_v38  ;;  %v1243_v42 = vpop.f32.mrb[87].mxu1  ;;  %1771 = vmatpush1.bf16.msra.mxu0 %v1354_v32  ;;  %v1318_v14 = vmax.f32 %v1238_v10, 0.0  ;;  %v2331_v32 = vld [vmem:[%s3119_s5 + $0x70] ss:$8 sps:$4 sm:$0xff]   ;;  %v2338_v37 = vld [vmem:[%s3119_s5 + $0xa4] ss:$8 sps:$4 sm:$0xff]  }
 0x285   :  { %v1244_v44 = vadd.f32 %v1243_v42, %v891_v38  ;;  %v1319_v46 = vmax.f32 %v1240_v6, 0.0  ;;  %v2337_v10 = vld [vmem:[%s3119_s5 + $0x90] ss:$8 sps:$4 sm:$0xff]   ;;  %v2340_v38 = vld [vmem:[%s3119_s5 + $0xa0] ss:$8 sps:$4 sm:$0xff]  }
 0x286   :  { %v1320_v11 = vmax.f32 %v1242_v41, 0.0  ;;  %v2341_v6 = vld [vmem:[%s3119_s5 + $0xb4] ss:$8 sps:$4 sm:$0xff]   ;;  %v2343_v40 = vld [vmem:[%s3119_s5 + $0xb0] ss:$8 sps:$4 sm:$0xff]  }
 0x287   :  { %v1321_v47 = vmax.f32 %v1244_v44, 0.0  ;;  %v2344_v41 = vld [vmem:[%s3119_s5 + $0xc4] ss:$8 sps:$4 sm:$0xff]   ;;  %v2346_v42 = vld [vmem:[%s3119_s5 + $0xc0] ss:$8 sps:$4 sm:$0xff]  }
 0x288   :  { %v1356_v48 = vpack.c.bf16 %v1320_v11, %v1318_v14  ;;  %v2347_v44 = vld [vmem:[%s3119_s5 + $0xd4] ss:$8 sps:$4 sm:$0xff]   ;;  %v2349_v14 = vld [vmem:[%s3119_s5 + $0xd0] ss:$8 sps:$4 sm:$0xff]   ;;  %v2350_v11 = vld [vmem:[%s3119_s5 + $0xe4] ss:$8 sps:$4 sm:$0xff]  }
 0x289   :  { %v1357_v15 = vpack.c.bf16 %v1321_v47, %v1319_v46  ;;  %v1247_v45 = vpop.f32.mrb[88].mxu1  ;;  %v2352_v46 = vld [vmem:[%s3119_s5 + $0xe0] ss:$8 sps:$4 sm:$0xff]   ;;  %v2353_v47 = vld [vmem:[%s3119_s5 + $0xf4] ss:$8 sps:$4 sm:$0xff]  }
 0x28a   :  { %v1248_v49 = vadd.f32 %v1247_v45, %v896_v50  ;;  %v1249_v24 = vpop.f32.mrb[89].mxu1  ;;  %v2042_v45 = vlaneseq }
 0x28b   :  { %v1250_v53 = vadd.f32 %v1249_v24, %v896_v50  ;;  %v1251_v58 = vpop.f32.mrb[90].mxu1  ;;  %1772 = vmatprep.subr.bf16.mxu0 %v1357_v15  ;;  %v2357_v50 = vmov 1966171168  }
 0x28c   :  { %v1252_v31 = vadd.f32 %v1251_v58, %v901_v28  ;;  %v1253_v35 = vpop.f32.mrb[91].mxu1  ;;  %1773 = vmatpush1.bf16.msra.mxu0 %v1356_v48  ;;  %v1322_v7 = vmax.f32 %v1248_v49, 0.0  ;;  %v2355_v48 = vld [vmem:[%s3119_s5 + $0xf0] ss:$8 sps:$4 sm:$0xff]   ;;  %v2056_v15 = vunpack.c.l.s4 %v2357_v50  ;;  %v3090_v24 = vshrl.u32 %v2042_v45, 7 }
 0x28d   :  { %v1254_v63 = vadd.f32 %v1253_v35, %v901_v28  ;;  %v1323_v43 = vmax.f32 %v1250_v53, 0.0  ;;  %v1429_v53 = vpop.permute.xlu0 %1428  ;;  %vm2132_vm1 = vcmp.lt.s32.totalorder %v2042_v45, 256 }
 0x28e   :  { %v1324_v39 = vmax.f32 %v1252_v31, 0.0  ;;  %v2057_v49 = vunpack.c.0.s8 %v2056_v15  ;;  %v3098_v31 = vld.sshfl [vmem:[%s3120_s7] sm:$0x11 pattern:$0x75316420] }
 0x28f   :  { %v1325_v0 = vmax.f32 %v1254_v63, 0.0 }
 0x290   :  { %v1358_v51 = vpack.c.bf16 %v1324_v39, %v1322_v7  ;;  %v3093_v28 = vsub.s32 %v2057_v49, %v3090_v24  ;;  %v2054_v7 = vcombine.high %v3098_v31, %v3098_v31  ;;  %v1434_v39 = vpop.permute.xlu1 %1433 }
 0x291   :  { %v1359_v54 = vpack.c.bf16 %v1325_v0, %v1323_v43  ;;  %v1257_v55 = vpop.f32.mrb[92].mxu1 }
 0x292   :  { %v1258_v56 = vadd.f32 %v1257_v55, %v906_v52  ;;  %v1259_v59 = vpop.f32.mrb[93].mxu1 }
 0x293   :  { %v1260_v60 = vadd.f32 %v1259_v59, %v906_v52  ;;  %v1261_v3 = vpop.f32.mrb[94].mxu1  ;;  %1774 = vmatprep.subr.bf16.mxu0 %v1359_v54  ;;  %v2068_v54 = vrot.slane %v2054_v7, %v3093_v28 }
 0x294   :  { %v1262_v62 = vadd.f32 %v1261_v3, %v911_v8  ;;  %v1263_v1 = vpop.f32.mrb[95].mxu1  ;;  %1775 = vmatpush1.bf16.msra.mxu0 %v1358_v51  ;;  %v1326_v4 = vmax.f32 %v1258_v56, 0.0 }
 0x295   :  { %v1264_v2 = vadd.f32 %v1263_v1, %v911_v8  ;;  %v1327_v12 = vmax.f32 %v1260_v60, 0.0  ;;  %2103 = vmatprep.mubr.bf16.mxu1 %v2068_v54 }
 0x296   :  { %v1328_v16 = vmax.f32 %v1262_v62, 0.0  ;;  %v1439_v62 = vpop.permute.xlu0 %1438 }
 0x297   :  { %v1329_v9 = vmax.f32 %v1264_v2, 0.0 }
 0x298   :  { %v1360_v17 = vpack.c.bf16 %v1328_v16, %v1326_v4 }
 0x299   :  { %v1361_v18 = vpack.c.bf16 %v1329_v9, %v1327_v12  ;;  %v1444_v12 = vpop.permute.xlu1 %1443 }
 0x29b   :  { %1776 = vmatprep.subr.bf16.mxu0 %v1361_v18 }
 0x29c   :  { %1777 = vmatpush1.bf16.msra.mxu0 %v1360_v17 }
 0x29f   :  { %1779 = vmatmul.mubr.bf16.vlgmr.msra.gmra.mrb[32].mxu0 %v2308_v19 }
 0x2a0   :  { %1788 = vmatprep.mubr.bf16.mxu0 %v2311_v20 }
 0x2a7   :  { %1789 = vmatmul.mubr.bf16.gmra.mrb[36].mxu0 %v2313_v57 }
 0x2a8   :  { %1798 = vmatprep.mubr.bf16.mxu0 %v2314_v21 }
 0x2af   :  { %1799 = vmatmul.mubr.bf16.gmra.mrb[40].mxu0 %v2316_v22 }
 0x2b0   :  { %1808 = vmatprep.mubr.bf16.mxu0 %v2317_v23 }
 0x2b7   :  { %1809 = vmatmul.mubr.bf16.gmra.mrb[44].mxu0 %v2319_v25 }
 0x2b8   :  { %1818 = vmatprep.mubr.bf16.mxu0 %v2320_v26  ;;  %v1449_v26 = vpop.permute.xlu0 %1448 }
 0x2bf   :  { %1819 = vmatmul.mubr.bf16.gmra.mrb[48].mxu0 %v2322_v13 }
 0x2c0   :  { %1828 = vmatprep.mubr.bf16.mxu0 %v2323_v27 }
 0x2c7   :  { %1829 = vmatmul.mubr.bf16.gmra.mrb[52].mxu0 %v2325_v29 }
 0x2c8   :  { %1838 = vmatprep.mubr.bf16.mxu0 %v2326_v5 }
 0x2cf   :  { %1839 = vmatmul.mubr.bf16.gmra.mrb[56].mxu0 %v2328_v61  ;;  %v1454_v61 = vpop.permute.xlu1 %1453 }
 0x2d0   :  { %1848 = vmatprep.mubr.bf16.mxu0 %v2329_v30 }
 0x2d7   :  { %1849 = vmatmul.mubr.bf16.gmra.mrb[60].mxu0 %v2331_v32 }
 0x2d8   :  { %1858 = vmatprep.mubr.bf16.mxu0 %v2332_v33 }
 0x2df   :  { %1859 = vmatmul.mubr.bf16.gmra.mrb[64].mxu0 %v2334_v34 }
 0x2e0   :  { %1868 = vmatprep.mubr.bf16.mxu0 %v2335_v36 }
 0x2e7   :  { %1869 = vmatmul.mubr.bf16.gmra.mrb[68].mxu0 %v2337_v10 }
 0x2e8   :  { %1878 = vmatprep.mubr.bf16.mxu0 %v2338_v37 }
 0x2ef   :  { %1879 = vmatmul.mubr.bf16.gmra.mrb[72].mxu0 %v2340_v38 }
 0x2f0   :  { %1888 = vmatprep.mubr.bf16.mxu0 %v2341_v6 }
 0x2f7   :  { %1889 = vmatmul.mubr.bf16.gmra.mrb[76].mxu0 %v2343_v40 }
 0x2f8   :  { %1898 = vmatprep.mubr.bf16.mxu0 %v2344_v41  ;;  %v1459_v41 = vpop.permute.xlu0 %1458 }
 0x2ff   :  { %1899 = vmatmul.mubr.bf16.gmra.mrb[80].mxu0 %v2346_v42 }
 0x300   :  { %1908 = vmatprep.mubr.bf16.mxu0 %v2347_v44 }
 0x307   :  { %1909 = vmatmul.mubr.bf16.gmra.mrb[84].mxu0 %v2349_v14 }
 0x308   :  { %1918 = vmatprep.mubr.bf16.mxu0 %v2350_v11 }
 0x30f   :  { %1919 = vmatmul.mubr.bf16.gmra.mrb[88].mxu0 %v2352_v46  ;;  %v1464_v46 = vpop.permute.xlu1 %1463 }
 0x310   :  { %1928 = vmatprep.mubr.bf16.mxu0 %v2353_v47 }
 0x313   :  { %v1474_v54 = vpop.permute.xlu1 %1473 }
 0x317   :  { %1929 = vmatmul.mubr.bf16.gmra.mrb[92].mxu0 %v2355_v48 }
 0x372   :  { %v1780_v58 = vpop.f32.mrb[32].mxu0 }
 0x373   :  { %v1781_v35 = vadd.f32 %v1780_v58, %v1429_v53  ;;  %v1782_v63 = vpop.f32.mrb[33].mxu0 }
 0x374   :  { %v1783_v43 = vadd.f32 %v1782_v63, %v1429_v53  ;;  %v1784_v0 = vpop.f32.mrb[34].mxu0 }
 0x375   :  { %v1785_v51 = vadd.f32 %v1784_v0, %v1434_v39  ;;  %v1786_v52 = vpop.f32.mrb[35].mxu0  ;;  %v1939_v56 = vmax.f32 %v1781_v35, 0.0 }
 0x376   :  { %v1787_v55 = vadd.f32 %v1786_v52, %v1434_v39  ;;  %v1940_v8 = vmax.f32 %v1783_v43, 0.0  ;;  %v1469_v39 = vpop.permute.xlu0 %1468 }
 0x377   :  { %v1941_v59 = vmax.f32 %v1785_v51, 0.0 }
 0x378   :  { %v1942_v60 = vmax.f32 %v1787_v55, 0.0 }
 0x379   :  { %v2003_v3 = vpack.c.bf16 %v1941_v59, %v1939_v56 }
 0x37a   :  { %v2004_v1 = vpack.c.bf16 %v1942_v60, %v1940_v8  ;;  %v1790_v2 = vpop.f32.mrb[36].mxu0 }
 0x37b   :  { %v1791_v4 = vadd.f32 %v1790_v2, %v1439_v62  ;;  %v1792_v16 = vpop.f32.mrb[37].mxu0 }
 0x37c   :  { %v1793_v9 = vadd.f32 %v1792_v16, %v1439_v62  ;;  %v1794_v17 = vpop.f32.mrb[38].mxu0  ;;  %2071 = vmatprep.subr.bf16.mxu1 %v2004_v1  ;;  %v1479_v16 = vpop.permute.xlu0 %1478 }
 0x37d   :  { %v1795_v18 = vadd.f32 %v1794_v17, %v1444_v12  ;;  %v1796_v19 = vpop.f32.mrb[39].mxu0  ;;  %2072 = vmatpush1.bf16.msra.mxu1 %v2003_v3  ;;  %v1943_v57 = vmax.f32 %v1791_v4, 0.0 }
 0x37e   :  { %v1797_v20 = vadd.f32 %v1796_v19, %v1444_v12  ;;  %v1944_v22 = vmax.f32 %v1793_v9, 0.0  ;;  %v1484_v19 = vpop.permute.xlu1 %1483 }
 0x37f   :  { %v1945_v21 = vmax.f32 %v1795_v18, 0.0 }
 0x380   :  { %v1946_v23 = vmax.f32 %v1797_v20, 0.0 }
 0x381   :  { %v2005_v25 = vpack.c.bf16 %v1945_v21, %v1943_v57 }
 0x382   :  { %v2006_v13 = vpack.c.bf16 %v1946_v23, %v1944_v22  ;;  %v1800_v27 = vpop.f32.mrb[40].mxu0 }
 0x383   :  { %v1801_v29 = vadd.f32 %v1800_v27, %v1449_v26  ;;  %v1802_v5 = vpop.f32.mrb[41].mxu0 }
 0x384   :  { %v1803_v30 = vadd.f32 %v1802_v5, %v1449_v26  ;;  %v1804_v32 = vpop.f32.mrb[42].mxu0  ;;  %2073 = vmatprep.subr.bf16.mxu1 %v2006_v13  ;;  %v1489_v5 = vpop.permute.xlu0 %1488 }
 0x385   :  { %v1805_v33 = vadd.f32 %v1804_v32, %v1454_v61  ;;  %v1806_v34 = vpop.f32.mrb[43].mxu0  ;;  %2074 = vmatpush1.bf16.msra.mxu1 %v2005_v25  ;;  %v1947_v10 = vmax.f32 %v1801_v29, 0.0 }
 0x386   :  { %v1807_v36 = vadd.f32 %v1806_v34, %v1454_v61  ;;  %v1948_v38 = vmax.f32 %v1803_v30, 0.0  ;;  %v1494_v34 = vpop.permute.xlu1 %1493 }
 0x387   :  { %v1949_v37 = vmax.f32 %v1805_v33, 0.0 }
 0x388   :  { %v1950_v6 = vmax.f32 %v1807_v36, 0.0 }
 0x389   :  { %v2007_v40 = vpack.c.bf16 %v1949_v37, %v1947_v10 }
 0x38a   :  { %v2008_v42 = vpack.c.bf16 %v1950_v6, %v1948_v38  ;;  %v1810_v44 = vpop.f32.mrb[44].mxu0 }
 0x38b   :  { %v1811_v14 = vadd.f32 %v1810_v44, %v1459_v41  ;;  %v1812_v11 = vpop.f32.mrb[45].mxu0 }
 0x38c   :  { %v1813_v47 = vadd.f32 %v1812_v11, %v1459_v41  ;;  %v1814_v48 = vpop.f32.mrb[46].mxu0  ;;  %2075 = vmatprep.subr.bf16.mxu1 %v2008_v42  ;;  %v1499_v11 = vpop.permute.xlu0 %1498 }
 0x38d   :  { %v1815_v50 = vadd.f32 %v1814_v48, %v1464_v46  ;;  %v1816_v15 = vpop.f32.mrb[47].mxu0  ;;  %2076 = vmatpush1.bf16.msra.mxu1 %v2007_v40  ;;  %v1951_v53 = vmax.f32 %v1811_v14, 0.0 }
 0x38e   :  { %v1817_v49 = vadd.f32 %v1816_v15, %v1464_v46  ;;  %v1952_v35 = vmax.f32 %v1813_v47, 0.0  ;;  %v1504_v15 = vpop.permute.xlu1 %1503 }
 0x38f   :  { %v1953_v58 = vmax.f32 %v1815_v50, 0.0 }
 0x390   :  { %v1954_v63 = vmax.f32 %v1817_v49, 0.0 }
 0x391   :  { %v2009_v7 = vpack.c.bf16 %v1953_v58, %v1951_v53 }
 0x392   :  { %v2010_v43 = vpack.c.bf16 %v1954_v63, %v1952_v35  ;;  %v1820_v0 = vpop.f32.mrb[48].mxu0 }
 0x393   :  { %v1821_v51 = vadd.f32 %v1820_v0, %v1469_v39  ;;  %v1822_v52 = vpop.f32.mrb[49].mxu0 }
 0x394   :  { %v1823_v55 = vadd.f32 %v1822_v52, %v1469_v39  ;;  %v1824_v56 = vpop.f32.mrb[50].mxu0  ;;  %2077 = vmatprep.subr.bf16.mxu1 %v2010_v43  ;;  %v1509_v52 = vpop.permute.xlu0 %1508 }
 0x395   :  { %v1825_v59 = vadd.f32 %v1824_v56, %v1474_v54  ;;  %v1826_v8 = vpop.f32.mrb[51].mxu0  ;;  %2078 = vmatpush1.bf16.msra.mxu1 %v2009_v7  ;;  %v1955_v3 = vmax.f32 %v1821_v51, 0.0 }
 0x396   :  { %v1827_v60 = vadd.f32 %v1826_v8, %v1474_v54  ;;  %v1956_v1 = vmax.f32 %v1823_v55, 0.0  ;;  %v1514_v8 = vpop.permute.xlu1 %1513 }
 0x397   :  { %v1957_v62 = vmax.f32 %v1825_v59, 0.0 }
 0x398   :  { %v1958_v2 = vmax.f32 %v1827_v60, 0.0 }
 0x399   :  { %v2011_v4 = vpack.c.bf16 %v1957_v62, %v1955_v3 }
 0x39a   :  { %v2012_v12 = vpack.c.bf16 %v1958_v2, %v1956_v1  ;;  %v1830_v9 = vpop.f32.mrb[52].mxu0 }
 0x39b   :  { %v1831_v17 = vadd.f32 %v1830_v9, %v1479_v16  ;;  %v1832_v18 = vpop.f32.mrb[53].mxu0 }
 0x39c   :  { %v1833_v20 = vadd.f32 %v1832_v18, %v1479_v16  ;;  %v1834_v57 = vpop.f32.mrb[54].mxu0  ;;  %2079 = vmatprep.subr.bf16.mxu1 %v2012_v12  ;;  %v1519_v18 = vpop.permute.xlu0 %1518 }
 0x39d   :  { %v1835_v21 = vadd.f32 %v1834_v57, %v1484_v19  ;;  %v1836_v22 = vpop.f32.mrb[55].mxu0  ;;  %2080 = vmatpush1.bf16.msra.mxu1 %v2011_v4  ;;  %v1959_v25 = vmax.f32 %v1831_v17, 0.0 }
 0x39e   :  { %v1837_v23 = vadd.f32 %v1836_v22, %v1484_v19  ;;  %v1960_v13 = vmax.f32 %v1833_v20, 0.0  ;;  %v1524_v22 = vpop.permute.xlu1 %1523 }
 0x39f   :  { %v1961_v26 = vmax.f32 %v1835_v21, 0.0 }
 0x3a0   :  { %v1962_v27 = vmax.f32 %v1837_v23, 0.0 }
 0x3a1   :  { %v2013_v29 = vpack.c.bf16 %v1961_v26, %v1959_v25 }
 0x3a2   :  { %v2014_v61 = vpack.c.bf16 %v1962_v27, %v1960_v13  ;;  %v1840_v30 = vpop.f32.mrb[56].mxu0 }
 0x3a3   :  { %v1841_v32 = vadd.f32 %v1840_v30, %v1489_v5  ;;  %v1842_v33 = vpop.f32.mrb[57].mxu0 }
 0x3a4   :  { %v1843_v36 = vadd.f32 %v1842_v33, %v1489_v5  ;;  %v1844_v10 = vpop.f32.mrb[58].mxu0  ;;  %2081 = vmatprep.subr.bf16.mxu1 %v2014_v61  ;;  %v1529_v33 = vpop.permute.xlu0 %1528 }
 0x3a5   :  { %v1845_v37 = vadd.f32 %v1844_v10, %v1494_v34  ;;  %v1846_v38 = vpop.f32.mrb[59].mxu0  ;;  %2082 = vmatpush1.bf16.msra.mxu1 %v2013_v29  ;;  %v1963_v40 = vmax.f32 %v1841_v32, 0.0 }
 0x3a6   :  { %v1847_v6 = vadd.f32 %v1846_v38, %v1494_v34  ;;  %v1964_v42 = vmax.f32 %v1843_v36, 0.0  ;;  %v1534_v38 = vpop.permute.xlu1 %1533 }
 0x3a7   :  { %v1965_v41 = vmax.f32 %v1845_v37, 0.0 }
 0x3a8   :  { %v1966_v44 = vmax.f32 %v1847_v6, 0.0 }
 0x3a9   :  { %v2015_v14 = vpack.c.bf16 %v1965_v41, %v1963_v40 }
 0x3aa   :  { %v2016_v46 = vpack.c.bf16 %v1966_v44, %v1964_v42  ;;  %v1850_v47 = vpop.f32.mrb[60].mxu0 }
 0x3ab   :  { %v1851_v48 = vadd.f32 %v1850_v47, %v1499_v11  ;;  %v1852_v50 = vpop.f32.mrb[61].mxu0 }
 0x3ac   :  { %v1853_v49 = vadd.f32 %v1852_v50, %v1499_v11  ;;  %v1854_v53 = vpop.f32.mrb[62].mxu0  ;;  %2083 = vmatprep.subr.bf16.mxu1 %v2016_v46  ;;  %v1539_v50 = vpop.permute.xlu0 %1538 }
 0x3ad   :  { %v1855_v58 = vadd.f32 %v1854_v53, %v1504_v15  ;;  %v1856_v35 = vpop.f32.mrb[63].mxu0  ;;  %2084 = vmatpush1.bf16.msra.mxu1 %v2015_v14  ;;  %v1967_v7 = vmax.f32 %v1851_v48, 0.0 }
 0x3ae   :  { %v1857_v63 = vadd.f32 %v1856_v35, %v1504_v15  ;;  %v1968_v43 = vmax.f32 %v1853_v49, 0.0  ;;  %v1544_v35 = vpop.permute.xlu1 %1543 }
 0x3af   :  { %v1969_v39 = vmax.f32 %v1855_v58, 0.0 }
 0x3b0   :  { %v1970_v0 = vmax.f32 %v1857_v63, 0.0 }
 0x3b1   :  { %v2017_v51 = vpack.c.bf16 %v1969_v39, %v1967_v7 }
 0x3b2   :  { %v2018_v54 = vpack.c.bf16 %v1970_v0, %v1968_v43  ;;  %v1860_v55 = vpop.f32.mrb[64].mxu0 }
 0x3b3   :  { %v1861_v56 = vadd.f32 %v1860_v55, %v1509_v52  ;;  %v1862_v59 = vpop.f32.mrb[65].mxu0 }
 0x3b4   :  { %v1863_v60 = vadd.f32 %v1862_v59, %v1509_v52  ;;  %v1864_v3 = vpop.f32.mrb[66].mxu0  ;;  %2085 = vmatprep.subr.bf16.mxu1 %v2018_v54  ;;  %v1549_v59 = vpop.permute.xlu0 %1548 }
 0x3b5   :  { %v1865_v62 = vadd.f32 %v1864_v3, %v1514_v8  ;;  %v1866_v1 = vpop.f32.mrb[67].mxu0  ;;  %2086 = vmatpush1.bf16.msra.mxu1 %v2017_v51  ;;  %v1971_v4 = vmax.f32 %v1861_v56, 0.0 }
 0x3b6   :  { %v1867_v2 = vadd.f32 %v1866_v1, %v1514_v8  ;;  %v1972_v12 = vmax.f32 %v1863_v60, 0.0  ;;  %v1554_v1 = vpop.permute.xlu1 %1553 }
 0x3b7   :  { %v1973_v16 = vmax.f32 %v1865_v62, 0.0 }
 0x3b8   :  { %v1974_v9 = vmax.f32 %v1867_v2, 0.0 }
 0x3b9   :  { %v2019_v17 = vpack.c.bf16 %v1973_v16, %v1971_v4 }
 0x3ba   :  { %v2020_v19 = vpack.c.bf16 %v1974_v9, %v1972_v12  ;;  %v1870_v20 = vpop.f32.mrb[68].mxu0 }
 0x3bb   :  { %v1871_v57 = vadd.f32 %v1870_v20, %v1519_v18  ;;  %v1872_v21 = vpop.f32.mrb[69].mxu0 }
 0x3bc   :  { %v1873_v23 = vadd.f32 %v1872_v21, %v1519_v18  ;;  %v1874_v25 = vpop.f32.mrb[70].mxu0  ;;  %2087 = vmatprep.subr.bf16.mxu1 %v2020_v19  ;;  %v1559_v21 = vpop.permute.xlu0 %1558 }
 0x3bd   :  { %v1875_v26 = vadd.f32 %v1874_v25, %v1524_v22  ;;  %v1876_v13 = vpop.f32.mrb[71].mxu0  ;;  %2088 = vmatpush1.bf16.msra.mxu1 %v2019_v17  ;;  %v1975_v29 = vmax.f32 %v1871_v57, 0.0 }
 0x3be   :  { %v1877_v27 = vadd.f32 %v1876_v13, %v1524_v22  ;;  %v1976_v61 = vmax.f32 %v1873_v23, 0.0  ;;  %v1564_v13 = vpop.permute.xlu1 %1563 }
 0x3bf   :  { %v1977_v5 = vmax.f32 %v1875_v26, 0.0 }
 0x3c0   :  { %v1978_v30 = vmax.f32 %v1877_v27, 0.0 }
 0x3c1   :  { %v2021_v32 = vpack.c.bf16 %v1977_v5, %v1975_v29 }
 0x3c2   :  { %v2022_v34 = vpack.c.bf16 %v1978_v30, %v1976_v61  ;;  %v1880_v36 = vpop.f32.mrb[72].mxu0 }
 0x3c3   :  { %v1881_v10 = vadd.f32 %v1880_v36, %v1529_v33  ;;  %v1882_v37 = vpop.f32.mrb[73].mxu0 }
 0x3c4   :  { %v1883_v6 = vadd.f32 %v1882_v37, %v1529_v33  ;;  %v1884_v40 = vpop.f32.mrb[74].mxu0  ;;  %2089 = vmatprep.subr.bf16.mxu1 %v2022_v34  ;;  %v1569_v37 = vpop.permute.xlu0 %1568 }
 0x3c5   :  { %v1885_v41 = vadd.f32 %v1884_v40, %v1534_v38  ;;  %v1886_v42 = vpop.f32.mrb[75].mxu0  ;;  %2090 = vmatpush1.bf16.msra.mxu1 %v2021_v32  ;;  %v1979_v14 = vmax.f32 %v1881_v10, 0.0 }
 0x3c6   :  { %v1887_v44 = vadd.f32 %v1886_v42, %v1534_v38  ;;  %v1980_v46 = vmax.f32 %v1883_v6, 0.0  ;;  %v1574_v42 = vpop.permute.xlu1 %1573 }
 0x3c7   :  { %v1981_v11 = vmax.f32 %v1885_v41, 0.0 }
 0x3c8   :  { %v1982_v47 = vmax.f32 %v1887_v44, 0.0 }
 0x3c9   :  { %v2023_v48 = vpack.c.bf16 %v1981_v11, %v1979_v14 }
 0x3ca   :  { %v2024_v15 = vpack.c.bf16 %v1982_v47, %v1980_v46  ;;  %v1890_v49 = vpop.f32.mrb[76].mxu0 }
 0x3cb   :  { %v1891_v53 = vadd.f32 %v1890_v49, %v1539_v50  ;;  %v1892_v58 = vpop.f32.mrb[77].mxu0 }
 0x3cc   :  { %v1893_v63 = vadd.f32 %v1892_v58, %v1539_v50  ;;  %v1894_v7 = vpop.f32.mrb[78].mxu0  ;;  %2091 = vmatprep.subr.bf16.mxu1 %v2024_v15  ;;  %v1579_v58 = vpop.permute.xlu0 %1578 }
 0x3cd   :  { %v1895_v39 = vadd.f32 %v1894_v7, %v1544_v35  ;;  %v1896_v43 = vpop.f32.mrb[79].mxu0  ;;  %2092 = vmatpush1.bf16.msra.mxu1 %v2023_v48  ;;  %v1983_v51 = vmax.f32 %v1891_v53, 0.0 }
 0x3ce   :  { %v1897_v0 = vadd.f32 %v1896_v43, %v1544_v35  ;;  %v1984_v54 = vmax.f32 %v1893_v63, 0.0  ;;  %v1584_v43 = vpop.permute.xlu1 %1583 }
 0x3cf   :  { %v1985_v52 = vmax.f32 %v1895_v39, 0.0 }
 0x3d0   :  { %v1986_v55 = vmax.f32 %v1897_v0, 0.0 }
 0x3d1   :  { %v2025_v56 = vpack.c.bf16 %v1985_v52, %v1983_v51 }
 0x3d2   :  { %v2026_v8 = vpack.c.bf16 %v1986_v55, %v1984_v54  ;;  %v1900_v60 = vpop.f32.mrb[80].mxu0 }
 0x3d3   :  { %v1901_v3 = vadd.f32 %v1900_v60, %v1549_v59  ;;  %v1902_v62 = vpop.f32.mrb[81].mxu0 }
 0x3d4   :  { %v1903_v2 = vadd.f32 %v1902_v62, %v1549_v59  ;;  %v1904_v4 = vpop.f32.mrb[82].mxu0  ;;  %2093 = vmatprep.subr.bf16.mxu1 %v2026_v8 }
 0x3d5   :  { %v1905_v16 = vadd.f32 %v1904_v4, %v1554_v1  ;;  %v1906_v12 = vpop.f32.mrb[83].mxu0  ;;  %2094 = vmatpush1.bf16.msra.mxu1 %v2025_v56  ;;  %v1987_v17 = vmax.f32 %v1901_v3, 0.0  ;;  %v2040_v4 = vpop.permute.xlu0 %2039 }
 0x3d6   :  { %v1907_v9 = vadd.f32 %v1906_v12, %v1554_v1  ;;  %v1988_v19 = vmax.f32 %v1903_v2, 0.0  ;;  %v2061_v1 = vrot.slane %v3098_v31, %v3093_v28  ;;  %v2044_v2 = vsub.s32 0, %v3090_v24 }
 0x3d7   :  { %v1989_v18 = vmax.f32 %v1905_v16, 0.0 }
 0x3d8   :  { %v1990_v20 = vmax.f32 %v1907_v9, 0.0  ;;  %v2045_v16 = vrot.slane %v2040_v4, %v2044_v2 }
 0x3d9   :  { %v2027_v57 = vpack.c.bf16 %v1989_v18, %v1987_v17 }
 0x3da   :  { %v2028_v22 = vpack.c.bf16 %v1990_v20, %v1988_v19  ;;  %v1910_v23 = vpop.f32.mrb[84].mxu0 }
 0x3db   :  { %v1911_v25 = vadd.f32 %v1910_v23, %v1559_v21  ;;  %v1912_v26 = vpop.f32.mrb[85].mxu0 }
 0x3dc   :  { %v1913_v27 = vadd.f32 %v1912_v26, %v1559_v21  ;;  %v1914_v29 = vpop.f32.mrb[86].mxu0  ;;  %2095 = vmatprep.subr.bf16.mxu1 %v2028_v22 }
 0x3dd   :  { %v1915_v5 = vadd.f32 %v1914_v29, %v1564_v13  ;;  %v1916_v61 = vpop.f32.mrb[87].mxu0  ;;  %2096 = vmatpush1.bf16.msra.mxu1 %v2027_v57  ;;  %v1991_v32 = vmax.f32 %v1911_v25, 0.0 }
 0x3de   :  { %v1917_v30 = vadd.f32 %v1916_v61, %v1564_v13  ;;  %v1992_v34 = vmax.f32 %v1913_v27, 0.0 }
 0x3df   :  { %v1993_v33 = vmax.f32 %v1915_v5, 0.0 }
 0x3e0   :  { %v1994_v36 = vmax.f32 %v1917_v30, 0.0 }
 0x3e1   :  { %v2029_v10 = vpack.c.bf16 %v1993_v33, %v1991_v32 }
 0x3e2   :  { %v2030_v38 = vpack.c.bf16 %v1994_v36, %v1992_v34  ;;  %v1920_v6 = vpop.f32.mrb[88].mxu0 }
 0x3e3   :  { %v1921_v40 = vadd.f32 %v1920_v6, %v1569_v37  ;;  %v1922_v41 = vpop.f32.mrb[89].mxu0 }
 0x3e4   :  { %v1923_v44 = vadd.f32 %v1922_v41, %v1569_v37  ;;  %v1924_v14 = vpop.f32.mrb[90].mxu0  ;;  %2097 = vmatprep.subr.bf16.mxu1 %v2030_v38 }
 0x3e5   :  { %v1925_v11 = vadd.f32 %v1924_v14, %v1574_v42  ;;  %v1926_v46 = vpop.f32.mrb[91].mxu0  ;;  %2098 = vmatpush1.bf16.msra.mxu1 %v2029_v10  ;;  %v1995_v48 = vmax.f32 %v1921_v40, 0.0 }
 0x3e6   :  { %v1927_v47 = vadd.f32 %v1926_v46, %v1574_v42  ;;  %v1996_v15 = vmax.f32 %v1923_v44, 0.0 }
 0x3e7   :  { %v1997_v50 = vmax.f32 %v1925_v11, 0.0 }
 0x3e8   :  { %v1998_v49 = vmax.f32 %v1927_v47, 0.0 }
 0x3e9   :  { %v2031_v53 = vpack.c.bf16 %v1997_v50, %v1995_v48 }
 0x3ea   :  { %v2032_v35 = vpack.c.bf16 %v1998_v49, %v1996_v15  ;;  %v1930_v63 = vpop.f32.mrb[92].mxu0 }
 0x3eb   :  { %v1931_v7 = vadd.f32 %v1930_v63, %v1579_v58  ;;  %v1932_v39 = vpop.f32.mrb[93].mxu0 }
 0x3ec   :  { %v1933_v0 = vadd.f32 %v1932_v39, %v1579_v58  ;;  %v1934_v51 = vpop.f32.mrb[94].mxu0  ;;  %2099 = vmatprep.subr.bf16.mxu1 %v2032_v35 }
 0x3ed   :  { %v1935_v52 = vadd.f32 %v1934_v51, %v1584_v43  ;;  %v1936_v54 = vpop.f32.mrb[95].mxu0  ;;  %2100 = vmatpush1.bf16.msra.mxu1 %v2031_v53  ;;  %v1999_v56 = vmax.f32 %v1931_v7, 0.0 }
 0x3ee   :  { %v1937_v55 = vadd.f32 %v1936_v54, %v1584_v43  ;;  %v2000_v8 = vmax.f32 %v1933_v0, 0.0 }
 0x3ef   :  { %v2001_v59 = vmax.f32 %v1935_v52, 0.0 }
 0x3f0   :  { %v2002_v60 = vmax.f32 %v1937_v55, 0.0 }
 0x3f1   :  { %v2033_v3 = vpack.c.bf16 %v2001_v59, %v1999_v56 }
 0x3f2   :  { %v2034_v62 = vpack.c.bf16 %v2002_v60, %v2000_v8 }
 0x3f4   :  { %2101 = vmatprep.subr.bf16.mxu1 %v2034_v62 }
 0x3f5   :  { %2102 = vmatpush1.bf16.msra.mxu1 %v2033_v3 }
 0x3f8   :  { %2104 = vmatmul.mubr.bf16.vlgmr.msra.gmra.mrb[96].mxu1 %v2061_v1 }
 0x4cb   :  { %v2105_v12 = vpop.f32.mrb[96].mxu1 }
 0x4cc   :  { %v2106_v9 = vadd.f32 %v2105_v12, %v2045_v16  ;;  %v2107_v17 = vpop.f32.mrb[97].mxu1 }
 0x4cd   :  { %v2108_v18 = vadd.f32 %v2107_v17, %v2045_v16  ;;  %v2109_v19 = vpop.f32.mrb[98].mxu1 }
 0x4ce   :  { %v2110_v20 = vpop.f32.mrb[99].mxu1 }
 0x4cf   :  { %v2114_v57 = vcombine.low %v2106_v9, %v2108_v18 }
 0x4d1   :  { %v2121_v21 = vrot.slane %v2114_v57, %v3093_v28 }
 0x4d3   :  { %v2128_v22 = vrot.slane %v2121_v21, %v3093_v28 }
 0x4d5   :  { %2134 = vst.msk [vmem:[%s3121_s9] sm:$0x3] %vm2132_vm1, %v2128_v22 }

</bundles_post_ra>
